<compile_context>
chip_gen: v5e
topology: v5e:2x2
jax: 0.10.0
libtpu: 0.0.40
codegen_flags: <defaults>
</compile_context>

<pallas_src>
import jax
import jax.numpy as jnp
from jax.experimental import pallas as pl
from jax.experimental.pallas import tpu as pltpu

INPUT_SIZE = 12
HIDDEN_SIZES = [400, 400, 400]
NUM_CLASSES = 10

HIDDEN_PAD = 512   # 400 -> 512 (multiple of 128)
OUT_PAD = 128      # 10  -> 128 (multiple of 128, lane-dense stores)

TB_MAX = 2048      # max batch tile (working set ~15 MB, fits every generation)
SUB = 16           # batch-tile granularity (bf16 sublane packing: 16 rows/vreg)


def _round_up(n, m):
    return pl.cdiv(n, m) * m


def _choose_tile(B, tb_max=TB_MAX):
    """Balanced batch tile, multiple of SUB, capped at tb_max; forces >=2 grid
    steps when there is more than one sublane-row of work (v7x megacore)."""
    B = max(B, 1)
    n_tiles = pl.cdiv(B, tb_max)
    tb = _round_up(pl.cdiv(B, n_tiles), SUB)
    b_pad_min = _round_up(B, SUB)
    if b_pad_min > SUB and _round_up(B, tb) // tb < 2:
        # Split into 2 tiles so both TensorCores get work on v7x.
        tb = _round_up(pl.cdiv(b_pad_min, 2), SUB)
    return tb


def qnet_kernel(x_ref,
                w1_ref, b1_ref,
                w2_ref, b2_ref,
                w3_ref, b3_ref,
                w4_ref, b4_ref,
                out_ref):
    # x tile: (TB, 12) bf16 (cast in wrapper).  Weights: bf16, padded.
    # Biases: f32, padded.  /10 is folded into w1 -> straight to the MXU.
    x = x_ref[...]

    h = jnp.dot(x, w1_ref[...], preferred_element_type=jnp.float32) + b1_ref[...]
    h = jnp.maximum(h, 0.0)

    h = jnp.dot(h.astype(jnp.bfloat16), w2_ref[...],
                preferred_element_type=jnp.float32) + b2_ref[...]
    h = jnp.maximum(h, 0.0)

    h = jnp.dot(h.astype(jnp.bfloat16), w3_ref[...],
                preferred_element_type=jnp.float32) + b3_ref[...]
    h = jnp.maximum(h, 0.0)

    out = jnp.dot(h.astype(jnp.bfloat16), w4_ref[...],
                  preferred_element_type=jnp.float32) + b4_ref[...]
    out_ref[...] = out.astype(out_ref.dtype)


def prepare_params(params):
    """One-time transform of f32 (w:(in,out), b:(1,out)) params:
    fold the /10 input scale into w1, zero-pad widths to 512 / 128,
    cast weights to bf16 (biases stay f32)."""
    (w1, b1), (w2, b2), (w3, b3), (w4, b4) = params
    w1 = w1 * 0.1  # fold x/10 into the first layer

    def pad_w(w, out_pad, in_pad=None):
        fi, fo = w.shape
        in_pad = fi if in_pad is None else in_pad
        return jnp.pad(w, ((0, in_pad - fi), (0, out_pad - fo)))

    def pad_b(b, out_pad):
        return jnp.pad(b, ((0, 0), (0, out_pad - b.shape[1])))

    w1p = pad_w(w1, HIDDEN_PAD).astype(jnp.bfloat16)               # (12,  512)
    w2p = pad_w(w2, HIDDEN_PAD, HIDDEN_PAD).astype(jnp.bfloat16)   # (512, 512)
    w3p = pad_w(w3, HIDDEN_PAD, HIDDEN_PAD).astype(jnp.bfloat16)   # (512, 512)
    w4p = pad_w(w4, OUT_PAD, HIDDEN_PAD).astype(jnp.bfloat16)      # (512, 128)
    b1p = pad_b(b1, HIDDEN_PAD).astype(jnp.float32)
    b2p = pad_b(b2, HIDDEN_PAD).astype(jnp.float32)
    b3p = pad_b(b3, HIDDEN_PAD).astype(jnp.float32)
    b4p = pad_b(b4, OUT_PAD).astype(jnp.float32)
    return (w1p, b1p, w2p, b2p, w3p, b3p, w4p, b4p)


def qnet_forward(x, packed, *, tb_max=TB_MAX):
    """x: (B, INPUT_SIZE) float32. packed: output of prepare_params()."""
    B = x.shape[0]
    tb = _choose_tile(B, tb_max)
    b_pad = _round_up(B, tb)

    # Cast + pad x in the wrapper: halves x DMA and removes a per-tile VPU cast.
    xb = x.astype(jnp.bfloat16)
    if b_pad != B:
        xb = jnp.pad(xb, ((0, b_pad - B), (0, 0)))

    grid = (b_pad // tb,)

    def resident(a):
        # Same block index every grid step -> stays VMEM-resident across steps;
        # single-buffered since it is never re-DMA'd.
        nd = a.ndim
        return pl.BlockSpec(a.shape, lambda i, _nd=nd: (0,) * _nd,
                            pipeline_mode=pl.Buffered(1))

    in_specs = [pl.BlockSpec((tb, INPUT_SIZE), lambda i: (i, 0))]
    in_specs += [resident(a) for a in packed]
    out_spec = pl.BlockSpec((tb, OUT_PAD), lambda i: (i, 0))

    out = pl.pallas_call(
        qnet_kernel,
        out_shape=jax.ShapeDtypeStruct((b_pad, OUT_PAD), jnp.float32),
        grid=grid,
        in_specs=in_specs,
        out_specs=out_spec,
        compiler_params=pltpu.CompilerParams(
            dimension_semantics=("parallel",),
            vmem_limit_bytes=48 << 20,
        ),
    )(xb, *packed)

    return out[:B, :NUM_CLASSES]


def init_params(key):
    """Deterministic init mimicking PyTorch nn.Linear defaults:
    U(-1/sqrt(fan_in), 1/sqrt(fan_in)) for both weight and bias."""
    sizes = [INPUT_SIZE] + HIDDEN_SIZES + [NUM_CLASSES]
    params = []
    for i in range(len(sizes) - 1):
        fan_in, fan_out = sizes[i], sizes[i + 1]
        key, kw, kb = jax.random.split(key, 3)
        bound = 1.0 / (fan_in ** 0.5)
        w = jax.random.uniform(kw, (fan_in, fan_out), jnp.float32, -bound, bound)
        b = jax.random.uniform(kb, (1, fan_out), jnp.float32, -bound, bound)
        params.append((w, b))
    return params


def reference_forward(x, params):
    # Original PyTorch semantics, full f32.
    h = x / 10.0
    for i, (w, b) in enumerate(params):
        h = h @ w + b
        if i < len(params) - 1:
            h = jnp.maximum(h, 0.0)
    return h


if __name__ == "__main__":
    key = jax.random.PRNGKey(0)
    params = init_params(jax.random.PRNGKey(0))
    packed = prepare_params(params)

    # Test 1: tiny batch (single grid step), the original small-shape check.
    key, kx = jax.random.split(key)
    B1 = 2
    x1 = jax.random.normal(kx, (B1, INPUT_SIZE), jnp.float32)
    out1 = jax.block_until_ready(qnet_forward(x1, packed))
    ref1 = reference_forward(x1, params)
    assert out1.shape == (B1, NUM_CLASSES)
    # bf16 matmul operands (f32 accumulation) -> loosened tolerance vs f32 ref.
    assert jnp.allclose(out1, ref1, atol=2e-2, rtol=2e-2), "mismatch (B=2)"

    # Test 2: B > tb and B not a multiple of the tile -> covers the multi-step
    # grid and the batch-padding path (use a small tb_max to keep shapes tiny).
    key, kx2 = jax.random.split(key)
    B2 = 37
    x2 = jax.random.normal(kx2, (B2, INPUT_SIZE), jnp.float32)
    out2 = jax.block_until_ready(qnet_forward(x2, packed, tb_max=16))
    ref2 = reference_forward(x2, params)
    assert out2.shape == (B2, NUM_CLASSES)
    assert jnp.allclose(out2, ref2, atol=2e-2, rtol=2e-2), "mismatch (B=37)"

    print("KERNEL_OK")
</pallas_src>

<mosaic_0001>
module attributes {stable_mosaic.version = 11 : i64} {
  func.func @qnet_kernel(%arg0: i32, %arg1: memref<16x12xbf16, #tpu.memory_space<vmem>>, %arg2: memref<12x512xbf16, #tpu.memory_space<vmem>>, %arg3: memref<1x512xf32, #tpu.memory_space<vmem>>, %arg4: memref<512x512xbf16, #tpu.memory_space<vmem>>, %arg5: memref<1x512xf32, #tpu.memory_space<vmem>>, %arg6: memref<512x512xbf16, #tpu.memory_space<vmem>>, %arg7: memref<1x512xf32, #tpu.memory_space<vmem>>, %arg8: memref<512x128xbf16, #tpu.memory_space<vmem>>, %arg9: memref<1x128xf32, #tpu.memory_space<vmem>>, %arg10: memref<16x128xf32, #tpu.memory_space<vmem>>) attributes {dimension_semantics = [#tpu.dimension_semantics<parallel>], iteration_bounds = array<i64: 1>, scalar_prefetch = 0 : i64, scratch_operands = 0 : i64, tpu.core_type = #tpu.core_type<tc>, window_params = [{transform_indices = @transform_0, window_bounds = array<i64: 16, 12>}, {pipeline_mode = #tpu.pipeline_mode<synchronous>, transform_indices = @transform_1, window_bounds = array<i64: 12, 512>}, {pipeline_mode = #tpu.pipeline_mode<synchronous>, transform_indices = @transform_2, window_bounds = array<i64: 1, 512>}, {pipeline_mode = #tpu.pipeline_mode<synchronous>, transform_indices = @transform_3, window_bounds = array<i64: 512, 512>}, {pipeline_mode = #tpu.pipeline_mode<synchronous>, transform_indices = @transform_4, window_bounds = array<i64: 1, 512>}, {pipeline_mode = #tpu.pipeline_mode<synchronous>, transform_indices = @transform_5, window_bounds = array<i64: 512, 512>}, {pipeline_mode = #tpu.pipeline_mode<synchronous>, transform_indices = @transform_6, window_bounds = array<i64: 1, 512>}, {pipeline_mode = #tpu.pipeline_mode<synchronous>, transform_indices = @transform_7, window_bounds = array<i64: 512, 128>}, {pipeline_mode = #tpu.pipeline_mode<synchronous>, transform_indices = @transform_8, window_bounds = array<i64: 1, 128>}, {transform_indices = @transform_9, window_bounds = array<i64: 16, 128>}]} {
    %c0 = arith.constant 0 : index
    %c0_0 = arith.constant 0 : index
    %0 = vector.load %arg1[%c0, %c0_0] : memref<16x12xbf16, #tpu.memory_space<vmem>>, vector<16x12xbf16>
    %c0_1 = arith.constant 0 : index
    %c0_2 = arith.constant 0 : index
    %1 = vector.load %arg2[%c0_1, %c0_2] : memref<12x512xbf16, #tpu.memory_space<vmem>>, vector<12x512xbf16>
    %cst = arith.constant dense<0.000000e+00> : vector<16x512xf32>
    %2 = tpu.matmul %0, %1, %cst {dimension_numbers = #tpu.dot_dimension_numbers<[1], [0], [0], [1], [0, 0, 1, 1], [], []>} : vector<16x12xbf16>, vector<12x512xbf16>, vector<16x512xf32> -> vector<16x512xf32>
    %c0_3 = arith.constant 0 : index
    %c0_4 = arith.constant 0 : index
    %3 = vector.load %arg3[%c0_3, %c0_4] : memref<1x512xf32, #tpu.memory_space<vmem>>, vector<1x512xf32>
    %4 = vector.broadcast %3 : vector<1x512xf32> to vector<16x512xf32>
    %5 = arith.addf %2, %4 : vector<16x512xf32>
    %cst_5 = arith.constant 0.000000e+00 : f32
    %6 = vector.broadcast %cst_5 : f32 to vector<16x512xf32>
    %7 = arith.maximumf %5, %6 : vector<16x512xf32>
    %8 = arith.truncf %7 : vector<16x512xf32> to vector<16x512xbf16>
    %c0_6 = arith.constant 0 : index
    %c0_7 = arith.constant 0 : index
    %9 = vector.load %arg4[%c0_6, %c0_7] : memref<512x512xbf16, #tpu.memory_space<vmem>>, vector<512x512xbf16>
    %cst_8 = arith.constant dense<0.000000e+00> : vector<16x512xf32>
    %10 = tpu.matmul %8, %9, %cst_8 {dimension_numbers = #tpu.dot_dimension_numbers<[1], [0], [0], [1], [0, 0, 1, 1], [], []>} : vector<16x512xbf16>, vector<512x512xbf16>, vector<16x512xf32> -> vector<16x512xf32>
    %c0_9 = arith.constant 0 : index
    %c0_10 = arith.constant 0 : index
    %11 = vector.load %arg5[%c0_9, %c0_10] : memref<1x512xf32, #tpu.memory_space<vmem>>, vector<1x512xf32>
    %12 = vector.broadcast %11 : vector<1x512xf32> to vector<16x512xf32>
    %13 = arith.addf %10, %12 : vector<16x512xf32>
    %cst_11 = arith.constant 0.000000e+00 : f32
    %14 = vector.broadcast %cst_11 : f32 to vector<16x512xf32>
    %15 = arith.maximumf %13, %14 : vector<16x512xf32>
    %16 = arith.truncf %15 : vector<16x512xf32> to vector<16x512xbf16>
    %c0_12 = arith.constant 0 : index
    %c0_13 = arith.constant 0 : index
    %17 = vector.load %arg6[%c0_12, %c0_13] : memref<512x512xbf16, #tpu.memory_space<vmem>>, vector<512x512xbf16>
    %cst_14 = arith.constant dense<0.000000e+00> : vector<16x512xf32>
    %18 = tpu.matmul %16, %17, %cst_14 {dimension_numbers = #tpu.dot_dimension_numbers<[1], [0], [0], [1], [0, 0, 1, 1], [], []>} : vector<16x512xbf16>, vector<512x512xbf16>, vector<16x512xf32> -> vector<16x512xf32>
    %c0_15 = arith.constant 0 : index
    %c0_16 = arith.constant 0 : index
    %19 = vector.load %arg7[%c0_15, %c0_16] : memref<1x512xf32, #tpu.memory_space<vmem>>, vector<1x512xf32>
    %20 = vector.broadcast %19 : vector<1x512xf32> to vector<16x512xf32>
    %21 = arith.addf %18, %20 : vector<16x512xf32>
    %cst_17 = arith.constant 0.000000e+00 : f32
    %22 = vector.broadcast %cst_17 : f32 to vector<16x512xf32>
    %23 = arith.maximumf %21, %22 : vector<16x512xf32>
    %24 = arith.truncf %23 : vector<16x512xf32> to vector<16x512xbf16>
    %c0_18 = arith.constant 0 : index
    %c0_19 = arith.constant 0 : index
    %25 = vector.load %arg8[%c0_18, %c0_19] : memref<512x128xbf16, #tpu.memory_space<vmem>>, vector<512x128xbf16>
    %cst_20 = arith.constant dense<0.000000e+00> : vector<16x128xf32>
    %26 = tpu.matmul %24, %25, %cst_20 {dimension_numbers = #tpu.dot_dimension_numbers<[1], [0], [0], [1], [0, 0, 1, 1], [], []>} : vector<16x512xbf16>, vector<512x128xbf16>, vector<16x128xf32> -> vector<16x128xf32>
    %c0_21 = arith.constant 0 : index
    %c0_22 = arith.constant 0 : index
    %27 = vector.load %arg9[%c0_21, %c0_22] : memref<1x128xf32, #tpu.memory_space<vmem>>, vector<1x128xf32>
    %28 = vector.broadcast %27 : vector<1x128xf32> to vector<16x128xf32>
    %29 = arith.addf %26, %28 : vector<16x128xf32>
    %c0_23 = arith.constant 0 : index
    %c0_24 = arith.constant 0 : index
    %30 = vector.load %arg10[%c0_23, %c0_24] : memref<16x128xf32, #tpu.memory_space<vmem>>, vector<16x128xf32>
    tpu.vector_store %arg10[%c0_23, %c0_24], %29 {strides = array<i32>} : memref<16x128xf32, #tpu.memory_space<vmem>>, vector<16x128xf32>,
    return
  }
  func.func @transform_0(%arg0: i32) -> (i32, i32) {
    %c0_i32 = arith.constant 0 : i32
    %c0_i32_0 = arith.constant 0 : i32
    return %arg0, %c0_i32 : i32, i32
  }
  func.func @transform_1(%arg0: i32) -> (i32, i32) {
    %c0_i32 = arith.constant 0 : i32
    %c0_i32_0 = arith.constant 0 : i32
    %c0_i32_1 = arith.constant 0 : i32
    return %c0_i32, %c0_i32_0 : i32, i32
  }
  func.func @transform_2(%arg0: i32) -> (i32, i32) {
    %c0_i32 = arith.constant 0 : i32
    %c0_i32_0 = arith.constant 0 : i32
    %c0_i32_1 = arith.constant 0 : i32
    return %c0_i32, %c0_i32_0 : i32, i32
  }
  func.func @transform_3(%arg0: i32) -> (i32, i32) {
    %c0_i32 = arith.constant 0 : i32
    %c0_i32_0 = arith.constant 0 : i32
    %c0_i32_1 = arith.constant 0 : i32
    return %c0_i32, %c0_i32_0 : i32, i32
  }
  func.func @transform_4(%arg0: i32) -> (i32, i32) {
    %c0_i32 = arith.constant 0 : i32
    %c0_i32_0 = arith.constant 0 : i32
    %c0_i32_1 = arith.constant 0 : i32
    return %c0_i32, %c0_i32_0 : i32, i32
  }
  func.func @transform_5(%arg0: i32) -> (i32, i32) {
    %c0_i32 = arith.constant 0 : i32
    %c0_i32_0 = arith.constant 0 : i32
    %c0_i32_1 = arith.constant 0 : i32
    return %c0_i32, %c0_i32_0 : i32, i32
  }
  func.func @transform_6(%arg0: i32) -> (i32, i32) {
    %c0_i32 = arith.constant 0 : i32
    %c0_i32_0 = arith.constant 0 : i32
    %c0_i32_1 = arith.constant 0 : i32
    return %c0_i32, %c0_i32_0 : i32, i32
  }
  func.func @transform_7(%arg0: i32) -> (i32, i32) {
    %c0_i32 = arith.constant 0 : i32
    %c0_i32_0 = arith.constant 0 : i32
    %c0_i32_1 = arith.constant 0 : i32
    return %c0_i32, %c0_i32_0 : i32, i32
  }
  func.func @transform_8(%arg0: i32) -> (i32, i32) {
    %c0_i32 = arith.constant 0 : i32
    %c0_i32_0 = arith.constant 0 : i32
    %c0_i32_1 = arith.constant 0 : i32
    return %c0_i32, %c0_i32_0 : i32, i32
  }
  func.func @transform_9(%arg0: i32) -> (i32, i32) {
    %c0_i32 = arith.constant 0 : i32
    %c0_i32_0 = arith.constant 0 : i32
    return %arg0, %c0_i32 : i32, i32
  }
}

</mosaic_0001>

<bundles_post_ra>
// kernel: tpu_custom_call.1
= control target key start
LH: loop header
LB: loop body
LE: loop exit
PB: predicated region body
PF: predicated region fallthrough
CT: control target
= control target key end

     0   :  { %14 = vsyncpa [#allocation3], 0  ;;  %s4477_s0 = inlined_call_operand.hbm [shape: bf16[16,12], index: 0, kind: input, shape index: {}]   ;;  %s4478_s1 = inlined_call_operand.hbm [shape: bf16[12,512], index: 1, kind: input, shape index: {}]   ;;  %s4479_s2 = inlined_call_operand.hbm [shape: f32[1,512], index: 2, kind: input, shape index: {}]   ;;  %s4480_s3 = inlined_call_operand.hbm [shape: bf16[512,512], index: 3, kind: input, shape index: {}]   ;;  %s4481_s4 = inlined_call_operand.hbm [shape: f32[1,512], index: 4, kind: input, shape index: {}]   ;;  %s4482_s5 = inlined_call_operand.hbm [shape: bf16[512,512], index: 5, kind: input, shape index: {}]   ;;  %s4483_s6 = inlined_call_operand.vmem [shape: f32[1,512], index: 6, kind: input, shape index: {}]   ;;  %s4484_s7 = inlined_call_operand.hbm [shape: bf16[512,128], index: 7, kind: input, shape index: {}]   ;;  %s4485_s8 = inlined_call_operand.vmem [shape: f32[1,128], index: 8, kind: input, shape index: {}]   ;;  %s4486_s9 = inlined_call_operand.hbm [shape: f32[16,128], index: 9, kind: output, shape index: {}]  }
   0x1   :  { %15 = vsyncpa [#allocation6], 0 }
   0x2   :  { %16 = vsyncpa [#allocation9], 0 }
   0x3   :  { %17 = vsyncpa [#allocation12], 0  ;;  %s36_s11 = sshll.u32 %s4478_s1, 4  ;;  %s37_s11 = int_to_ptr.hbm [resolvable:$true] %s36_s11 }
   0x4   :  { %18 = vsyncpa [#allocation4], 0  ;;  %s4315_s12 = smov [#allocation5]   ;;  %s60_s16 = sshll.u32 %s4480_s3, 4  ;;  %s61_s16 = int_to_ptr.hbm [resolvable:$true] %s60_s16 }
   0x5   :  { %s38_s13 = sshll.u32 %s4315_s12, 4  ;;  %s4316_s17 = smov 256   ;;  %s39_s13 = int_to_ptr.vmem [resolvable:$true] %s38_s13 }
   0x6   :  { %s4317_s18 = smov 16   ;;  %s4318_s19 = smov [#allocation8]  }
   0x7   :  { %44 = dma.hbm_to_vmem [thread:$0]  %s37_s11, 512, %s39_s13, [#allocation6], %s4316_s17, %s4316_s17, %s4317_s18  }
   0x8   :  { %s62_s20 = sshll.u32 %s4318_s19, 4  ;;  %s84_s23 = sshll.u32 %s4482_s5, 4  ;;  %s63_s20 = int_to_ptr.vmem [resolvable:$true] %s62_s20  ;;  %s85_s23 = int_to_ptr.hbm [resolvable:$true] %s84_s23 }
   0x9   :  { %68 = dma.hbm_to_vmem [thread:$0]  %s61_s16, 16384, %s63_s20, [#allocation9], %s4316_s17, %s4316_s17, %s4317_s18  }
   0xa   :  { %s23_s25 = sshll.u32 %s4477_s0, 4  ;;  %s4319_s26 = smov [#allocation11]   ;;  %s24_s25 = int_to_ptr.hbm [resolvable:$true] %s23_s25 }
   0xb   :  { %s86_s27 = sshll.u32 %s4319_s26, 4  ;;  %s4320_s3 = smov [#allocation2]   ;;  %s87_s27 = int_to_ptr.vmem [resolvable:$true] %s86_s27 }
   0xc   :  { %92 = dma.hbm_to_vmem [thread:$0]  %s85_s23, 16384, %s87_s27, [#allocation12], %s4316_s17, %s4316_s17, %s4317_s18  }
   0xd   :  { %s25_s28 = sshll.u32 %s4320_s3, 4  ;;  %s4321_s29 = smov 64   ;;  %s26_s28 = int_to_ptr.vmem [resolvable:$true] %s25_s28 }
   0xe   :  { %s4322_s30 = smov 4   ;;  %s50_s11 = sshll.u32 %s4479_s2, 4  ;;  %s51_s11 = int_to_ptr.hbm [resolvable:$true] %s50_s11 }
   0xf   :  { %31 = dma.hbm_to_vmem [thread:$0]  %s24_s25, 128, %s26_s28, [#allocation3], %s4321_s29, %s4321_s29, %s4322_s30  }
  0x10   :  { %s4323_s12 = smov [#allocation7]   ;;  %s74_s15 = sshll.u32 %s4481_s4, 4  ;;  %s75_s15 = int_to_ptr.hbm [resolvable:$true] %s74_s15 }
  0x11   :  { %s52_s13 = sshll.u32 %s4323_s12, 4  ;;  %s4324_s16 = smov [#allocation10]   ;;  %s53_s13 = int_to_ptr.vmem [resolvable:$true] %s52_s13 }
  0x12   :  { %55 = dma.hbm_to_vmem [thread:$0]  %s51_s11, 64, %s53_s13, [#allocation6]  }
  0x13   :  { %s76_s17 = sshll.u32 %s4324_s16, 4  ;;  %s99_s20 = sshll.u32 %s4484_s7, 4  ;;  %s77_s17 = int_to_ptr.vmem [resolvable:$true] %s76_s17  ;;  %s100_s20 = int_to_ptr.hbm [resolvable:$true] %s99_s20 }
  0x14   :  { %79 = dma.hbm_to_vmem [thread:$0]  %s75_s15, 64, %s77_s17, [#allocation9]  }
  0x15   :  { %s4325_s2 = smov [#allocation13]  }
  0x16   :  { %s101_s21 = sshll.u32 %s4325_s2, 4  ;;  %s102_s21 = int_to_ptr.vmem [resolvable:$true] %s101_s21 }
  0x17   :  { %107 = dma.hbm_to_vmem [thread:$0]  %s100_s20, 4096, %s102_s21, [#allocation12], %s4321_s29, %s4321_s29, %s4322_s30  }
  0x18   :  { %4305 = dma.done.wait [#allocation3], 128  }
  0x19   :  { %4306 = vsyncadd [#allocation3], 4294967168 }
  0x1a   :  { %4307 = dma.done.wait [#allocation6], 576  }
  0x1b   :  { %4308 = vsyncadd [#allocation6], 4294966720 }
  0x1c   :  { %4309 = dma.done.wait [#allocation9], 16448  }
  0x1d   :  { %4310 = vsyncadd [#allocation9], 4294950848 }
  0x1e   :  { %4311 = dma.done.wait [#allocation12], 20480  }
  0x1f   :  { %4312 = vsyncadd [#allocation12], 4294946816  ;;  %vm180_vm0 = vcmask 1045504   ;;  %v2635_v0 = vld [vmem:[#allocation5] sm:$0xf]  ;;  %vm176_vm1 = vcmask 97280  }
  0x20   :  { %v3808_v1 = vld [vmem:[#allocation5 + $0xc] sm:$0x30]  ;;  %v3806_v2 = vld [vmem:[#allocation5 + $0x4] sm:$0xf]  ;;  %v2637_v4 = vld [vmem:[#allocation5 + $0x10] sm:$0x30] }
  0x21   :  { %v2636_v3 = vor.u32 %v3808_v1, %v2635_v0  ;;  %v2643_v5 = vld [vmem:[#allocation5 + $0x8] sm:$0xf]  ;;  %v3809_v6 = vld [vmem:[#allocation5 + $0x14] sm:$0x30]  ;;  %v2640_v7 = vor.u32 %v3806_v2, %v2637_v4  ;;  %v3807_v9 = vld [vmem:[#allocation5 + $0xc] sm:$0xf] }
  0x22   :  { %v2644_v8 = vor.u32 %v3809_v6, %v2643_v5  ;;  %v2645_v10 = vld [vmem:[#allocation5 + $0x18] sm:$0x30]  ;;  %v2767_v14 = vld [vmem:[#allocation8 + $0xe0] sm:$0xf]  ;;  %v3840_v15 = vld [vmem:[#allocation8 + $0xec] sm:$0xf0] }
  0x23   :  { %v182_v11 = vsel %vm180_vm0, %v2636_v3, 0  ;;  %v2648_v12 = vor.u32 %v3807_v9, %v2645_v10  ;;  %v3805_v13 = vld [vmem:[#allocation2] sm:$0xff]  ;;  %v185_v16 = vsel %vm180_vm0, %v2640_v7, 0  ;;  %v2768_v18 = vor.u32 %v3840_v15, %v2767_v14  ;;  %v2895_v19 = vld [vmem:[#allocation8 + $0x1e0] sm:$0xf]  ;;  %s4326_s23 = smov [#allocation14]  }
  0x24   :  { %200 = vmatpush.bf16.msra.mxu0 %v182_v11  ;;  %v188_v17 = vsel %vm180_vm0, %v2644_v8, 0  ;;  %v3872_v20 = vld [vmem:[#allocation8 + $0x1ec] sm:$0xf0]  ;;  %214 = vmatpush.bf16.msra.mxu1 %v185_v16  ;;  %v2751_v23 = vld [vmem:[#allocation8 + $0xc0] sm:$0xf]  ;;  %s2611_s1 = sshll.u32 %s4326_s23, 4  ;;  %s2612_s1 = int_to_ptr.vmem [resolvable:$true] %s2611_s1 }
  0x25   :  { %228 = vmatpush.bf16.msra.mxu2 %v188_v17  ;;  %v191_v21 = vsel %vm180_vm0, %v2648_v12, 0  ;;  %v2896_v22 = vor.u32 %v3872_v20, %v2895_v19  ;;  %v3836_v24 = vld [vmem:[#allocation8 + $0xcc] sm:$0xf0]  ;;  %v2879_v26 = vld [vmem:[#allocation8 + $0x1c0] sm:$0xf]  ;;  %s2613_s26 = sshll.u32 %s4486_s9, 4  ;;  %s2614_s26 = int_to_ptr.hbm [resolvable:$true] %s2613_s26 }
  0x26   :  { %242 = vmatpush.bf16.msra.mxu3 %v191_v21  ;;  %v2752_v25 = vor.u32 %v3836_v24, %v2751_v23  ;;  %v3868_v27 = vld [vmem:[#allocation8 + $0x1cc] sm:$0xf0]  ;;  %v3023_v28 = vld [vmem:[#allocation8 + $0x2e0] sm:$0xf]  ;;  %s4328_s27 = smov 8  }
  0x27   :  { %2649 = vmatmul.msk.bf16.vlgmr.msra.gmra.mxu0 %vm176_vm1, %v3805_v13  ;;  %v2880_v29 = vor.u32 %v3868_v27, %v2879_v26  ;;  %v3904_v30 = vld [vmem:[#allocation8 + $0x2ec] sm:$0xf0]  ;;  %v3151_v31 = vld [vmem:[#allocation8 + $0x3e0] sm:$0xf]  ;;  %2650 = vmatmul.msk.bf16.vlgmr.msra.gmra.mxu1 %vm176_vm1, %v3805_v13 }
  0x28   :  { %1039 = vmatpush.bf16.msrb.mxu0 %v2768_v18  ;;  %1053 = vmatpush.bf16.msrb.mxu1 %v2896_v22  ;;  %v3936_v32 = vld [vmem:[#allocation8 + $0x3ec] sm:$0xf0]  ;;  %v3024_v33 = vor.u32 %v3904_v30, %v3023_v28  ;;  %v2735_v35 = vld [vmem:[#allocation8 + $0xa0] sm:$0xf] }
  0x29   :  { %2651 = vmatmul.msk.bf16.vlgmr.msra.gmra.mxu2 %vm176_vm1, %v3805_v13  ;;  %v3152_v34 = vor.u32 %v3936_v32, %v3151_v31  ;;  %v3832_v36 = vld [vmem:[#allocation8 + $0xac] sm:$0xf0]  ;;  %v2863_v37 = vld [vmem:[#allocation8 + $0x1a0] sm:$0xf]  ;;  %2652 = vmatmul.msk.bf16.vlgmr.msra.gmra.mxu3 %vm176_vm1, %v3805_v13 }
  0x2a   :  { %v3864_v38 = vld [vmem:[#allocation8 + $0x1ac] sm:$0xf0]  ;;  %v3007_v39 = vld [vmem:[#allocation8 + $0x2c0] sm:$0xf]  ;;  %1067 = vmatpush.bf16.msrb.mxu2 %v3024_v33  ;;  %v2736_v41 = vor.u32 %v3832_v36, %v2735_v35 }
  0x2b   :  { %v3900_v40 = vld [vmem:[#allocation8 + $0x2cc] sm:$0xf0]  ;;  %v3135_v43 = vld [vmem:[#allocation8 + $0x3c0] sm:$0xf]  ;;  %1081 = vmatpush.bf16.msrb.mxu3 %v3152_v34  ;;  %v2864_v46 = vor.u32 %v3864_v38, %v2863_v37  ;;  %v3838_v37 = vld [vmem:[#allocation8 + $0xe4] sm:$0xf] }
  0x2c   :  { %1040 = vmatpush.bf16.msrb.mxu0 %v2752_v25  ;;  %v3008_v42 = vor.u32 %v3900_v40, %v3007_v39  ;;  %v3932_v44 = vld [vmem:[#allocation8 + $0x3cc] sm:$0xf0]  ;;  %v2719_v45 = vld [vmem:[#allocation8 + $0x80] sm:$0xf]  ;;  %1054 = vmatpush.bf16.msrb.mxu1 %v2880_v29  ;;  %v2769_v38 = vld [vmem:[#allocation8 + $0xf0] sm:$0xf0] }
  0x2d   :  { %v3136_v47 = vor.u32 %v3932_v44, %v3135_v43  ;;  %v3828_v48 = vld [vmem:[#allocation8 + $0x8c] sm:$0xf0]  ;;  %v2847_v49 = vld [vmem:[#allocation8 + $0x180] sm:$0xf]  ;;  %v3870_v39 = vld [vmem:[#allocation8 + $0x1e4] sm:$0xf] }
  0x2e   :  { %v3860_v50 = vld [vmem:[#allocation8 + $0x18c] sm:$0xf0]  ;;  %v2991_v51 = vld [vmem:[#allocation8 + $0x2a0] sm:$0xf]  ;;  %1068 = vmatpush.bf16.msrb.mxu2 %v3008_v42  ;;  %v2720_v55 = vor.u32 %v3828_v48, %v2719_v45  ;;  %v2897_v40 = vld [vmem:[#allocation8 + $0x1f0] sm:$0xf0]  ;;  %v2772_v48 = vor.u32 %v3838_v37, %v2769_v38 }
  0x2f   :  { %v3896_v52 = vld [vmem:[#allocation8 + $0x2ac] sm:$0xf0]  ;;  %v3119_v53 = vld [vmem:[#allocation8 + $0x3a0] sm:$0xf]  ;;  %1082 = vmatpush.bf16.msrb.mxu3 %v3136_v47  ;;  %v2848_v59 = vor.u32 %v3860_v50, %v2847_v49  ;;  %v3834_v45 = vld [vmem:[#allocation8 + $0xc4] sm:$0xf] }
  0x30   :  { %v3928_v54 = vld [vmem:[#allocation8 + $0x3ac] sm:$0xf0]  ;;  %1041 = vmatpush.bf16.msrb.mxu0 %v2736_v41  ;;  %v2992_v56 = vor.u32 %v3896_v52, %v2991_v51  ;;  %v2703_v57 = vld [vmem:[#allocation8 + $0x60] sm:$0xf]  ;;  %1055 = vmatpush.bf16.msrb.mxu1 %v2864_v46  ;;  %v2753_v46 = vld [vmem:[#allocation8 + $0xd0] sm:$0xf0]  ;;  %v2900_v52 = vor.u32 %v3870_v39, %v2897_v40 }
  0x31   :  { %v3824_v58 = vld [vmem:[#allocation8 + $0x6c] sm:$0xf0]  ;;  %v3120_v60 = vor.u32 %v3928_v54, %v3119_v53  ;;  %v2831_v61 = vld [vmem:[#allocation8 + $0x160] sm:$0xf]  ;;  %v3866_v49 = vld [vmem:[#allocation8 + $0x1c4] sm:$0xf] }
  0x32   :  { %v2975_v62 = vld [vmem:[#allocation8 + $0x280] sm:$0xf]  ;;  %v3892_v63 = vld [vmem:[#allocation8 + $0x28c] sm:$0xf0]  ;;  %1069 = vmatpush.bf16.msrb.mxu2 %v2992_v56  ;;  %v2704_v3 = vor.u32 %v3824_v58, %v2703_v57  ;;  %v2881_v54 = vld [vmem:[#allocation8 + $0x1d0] sm:$0xf0] }
  0x33   :  { %v3856_v0 = vld [vmem:[#allocation8 + $0x16c] sm:$0xf0]  ;;  %v3103_v1 = vld [vmem:[#allocation8 + $0x380] sm:$0xf]  ;;  %v2976_v4 = vor.u32 %v3892_v63, %v2975_v62  ;;  %1083 = vmatpush.bf16.msrb.mxu3 %v3120_v60  ;;  %v3025_v56 = vld [vmem:[#allocation8 + $0x2f0] sm:$0xf0]  ;;  %v2756_v62 = vor.u32 %v3834_v45, %v2753_v46 }
  0x34   :  { %v3924_v2 = vld [vmem:[#allocation8 + $0x38c] sm:$0xf0]  ;;  %1042 = vmatpush.bf16.msrb.mxu0 %v2720_v55  ;;  %v2687_v5 = vld [vmem:[#allocation8 + $0x40] sm:$0xf]  ;;  %1056 = vmatpush.bf16.msrb.mxu1 %v2848_v59  ;;  %v2832_v7 = vor.u32 %v3856_v0, %v2831_v61  ;;  %v3902_v55 = vld [vmem:[#allocation8 + $0x2e4] sm:$0xf] }
  0x35   :  { %v3820_v6 = vld [vmem:[#allocation8 + $0x4c] sm:$0xf0]  ;;  %v3104_v8 = vor.u32 %v3924_v2, %v3103_v1  ;;  %v2815_v9 = vld [vmem:[#allocation8 + $0x140] sm:$0xf]  ;;  %v3934_v60 = vld [vmem:[#allocation8 + $0x3e4] sm:$0xf]  ;;  %v3028_v63 = vor.u32 %v3902_v55, %v3025_v56  ;;  %v2884_v1 = vor.u32 %v3866_v49, %v2881_v54 }
  0x36   :  { %v2959_v10 = vld [vmem:[#allocation8 + $0x260] sm:$0xf]  ;;  %v3888_v11 = vld [vmem:[#allocation8 + $0x26c] sm:$0xf0]  ;;  %1070 = vmatpush.bf16.msrb.mxu2 %v2976_v4  ;;  %v2688_v15 = vor.u32 %v3820_v6, %v2687_v5  ;;  %v3153_v61 = vld [vmem:[#allocation8 + $0x3f0] sm:$0xf0] }
  0x37   :  { %v3852_v12 = vld [vmem:[#allocation8 + $0x14c] sm:$0xf0]  ;;  %v3087_v13 = vld [vmem:[#allocation8 + $0x360] sm:$0xf]  ;;  %v2960_v16 = vor.u32 %v3888_v11, %v2959_v10  ;;  %1084 = vmatpush.bf16.msrb.mxu3 %v3104_v8  ;;  %v3830_v0 = vld [vmem:[#allocation8 + $0xa4] sm:$0xf]  ;;  %v3156_v6 = vor.u32 %v3934_v60, %v3153_v61 }
  0x38   :  { %v3920_v14 = vld [vmem:[#allocation8 + $0x36c] sm:$0xf0]  ;;  %1043 = vmatpush.bf16.msrb.mxu0 %v2704_v3  ;;  %v2671_v17 = vld [vmem:[#allocation8 + $0x20] sm:$0xf]  ;;  %1057 = vmatpush.bf16.msrb.mxu1 %v2832_v7  ;;  %v2816_v19 = vor.u32 %v3852_v12, %v2815_v9  ;;  %v2737_v3 = vld [vmem:[#allocation8 + $0xb0] sm:$0xf0] }
  0x39   :  { %v3816_v18 = vld [vmem:[#allocation8 + $0x2c] sm:$0xf0]  ;;  %v3088_v20 = vor.u32 %v3920_v14, %v3087_v13  ;;  %v2799_v21 = vld [vmem:[#allocation8 + $0x120] sm:$0xf]  ;;  %v3898_v4 = vld [vmem:[#allocation8 + $0x2c4] sm:$0xf]  ;;  %v2740_v11 = vor.u32 %v3830_v0, %v2737_v3 }
  0x3a   :  { %v2943_v22 = vld [vmem:[#allocation8 + $0x240] sm:$0xf]  ;;  %v3884_v23 = vld [vmem:[#allocation8 + $0x24c] sm:$0xf0]  ;;  %1071 = vmatpush.bf16.msrb.mxu2 %v2960_v16  ;;  %v2672_v27 = vor.u32 %v3816_v18, %v2671_v17  ;;  %v3009_v5 = vld [vmem:[#allocation8 + $0x2d0] sm:$0xf0] }
  0x3b   :  { %v3848_v24 = vld [vmem:[#allocation8 + $0x12c] sm:$0xf0]  ;;  %v3071_v25 = vld [vmem:[#allocation8 + $0x340] sm:$0xf]  ;;  %v2944_v28 = vor.u32 %v3884_v23, %v2943_v22  ;;  %1085 = vmatpush.bf16.msrb.mxu3 %v3088_v20  ;;  %v3862_v7 = vld [vmem:[#allocation8 + $0x1a4] sm:$0xf]  ;;  %v3012_v12 = vor.u32 %v3898_v4, %v3009_v5 }
  0x3c   :  { %v3916_v26 = vld [vmem:[#allocation8 + $0x34c] sm:$0xf0]  ;;  %1044 = vmatpush.bf16.msrb.mxu0 %v2688_v15  ;;  %v2655_v29 = vld [vmem:[#allocation8] sm:$0xf]  ;;  %1058 = vmatpush.bf16.msrb.mxu1 %v2816_v19  ;;  %v2800_v32 = vor.u32 %v3848_v24, %v2799_v21  ;;  %v2865_v8 = vld [vmem:[#allocation8 + $0x1b0] sm:$0xf0] }
  0x3d   :  { %v3812_v30 = vld [vmem:[#allocation8 + $0xc] sm:$0xf0]  ;;  %v2783_v31 = vld [vmem:[#allocation8 + $0x100] sm:$0xf]  ;;  %v3072_v33 = vor.u32 %v3916_v26, %v3071_v25  ;;  %v3930_v9 = vld [vmem:[#allocation8 + $0x3c4] sm:$0xf]  ;;  %v2868_v13 = vor.u32 %v3862_v7, %v2865_v8 }
  0x3e   :  { %v3844_v34 = vld [vmem:[#allocation8 + $0x10c] sm:$0xf0]  ;;  %v2927_v35 = vld [vmem:[#allocation8 + $0x220] sm:$0xf]  ;;  %1072 = vmatpush.bf16.msrb.mxu2 %v2944_v28  ;;  %v2656_v43 = vor.u32 %v3812_v30, %v2655_v29  ;;  %v3137_v10 = vld [vmem:[#allocation8 + $0x3d0] sm:$0xf0] }
  0x3f   :  { %v3880_v36 = vld [vmem:[#allocation8 + $0x22c] sm:$0xf0]  ;;  %v3055_v41 = vld [vmem:[#allocation8 + $0x320] sm:$0xf]  ;;  %1086 = vmatpush.bf16.msrb.mxu3 %v3072_v33  ;;  %v2784_v47 = vor.u32 %v3844_v34, %v2783_v31  ;;  %v3826_v14 = vld [vmem:[#allocation8 + $0x84] sm:$0xf]  ;;  %v3140_v16 = vor.u32 %v3930_v9, %v3137_v10 }
  0x40   :  { %v3912_v42 = vld [vmem:[#allocation8 + $0x32c] sm:$0xf0]  ;;  %1045 = vmatpush.bf16.msrb.mxu0 %v2672_v27  ;;  %v2928_v44 = vor.u32 %v3880_v36, %v2927_v35  ;;  %1059 = vmatpush.bf16.msrb.mxu1 %v2800_v32  ;;  %v2911_v50 = vld [vmem:[#allocation8 + $0x200] sm:$0xf]  ;;  %v2721_v15 = vld [vmem:[#allocation8 + $0x90] sm:$0xf0] }
  0x41   :  { %v3876_v51 = vld [vmem:[#allocation8 + $0x20c] sm:$0xf0]  ;;  %v3056_v53 = vor.u32 %v3912_v42, %v3055_v41  ;;  %v3039_v57 = vld [vmem:[#allocation8 + $0x300] sm:$0xf]  ;;  %v3858_v17 = vld [vmem:[#allocation8 + $0x184] sm:$0xf]  ;;  %v2724_v19 = vor.u32 %v3826_v14, %v2721_v15 }
  0x42   :  { %v3908_v58 = vld [vmem:[#allocation8 + $0x30c] sm:$0xf0]  ;;  %1073 = vmatpush.bf16.msrb.mxu2 %v2928_v44  ;;  %v2912_v59 = vor.u32 %v3876_v51, %v2911_v50  ;;  %v2849_v18 = vld [vmem:[#allocation8 + $0x190] sm:$0xf0]  ;;  %v3894_v21 = vld [vmem:[#allocation8 + $0x2a4] sm:$0xf] }
  0x43   :  { %1087 = vmatpush.bf16.msrb.mxu3 %v3056_v53  ;;  %v3040_v2 = vor.u32 %v3908_v58, %v3039_v57  ;;  %v2852_v20 = vor.u32 %v3858_v17, %v2849_v18  ;;  %v2993_v22 = vld [vmem:[#allocation8 + $0x2b0] sm:$0xf0]  ;;  %v3926_v23 = vld [vmem:[#allocation8 + $0x3a4] sm:$0xf]  ;;  %v145_v17 = vld [vmem:[#allocation7] sm:$0xf] }
  0x44   :  { %1046 = vmatpush.bf16.msrb.mxu0 %v2656_v43  ;;  %1060 = vmatpush.bf16.msrb.mxu1 %v2784_v47  ;;  %v2996_v24 = vor.u32 %v3894_v21, %v2993_v22  ;;  %v3121_v25 = vld [vmem:[#allocation8 + $0x3b0] sm:$0xf0]  ;;  %v3822_v27 = vld [vmem:[#allocation8 + $0x64] sm:$0xf]  ;;  %v148_v21 = vperm.slane %v145_v17, 1 }
  0x45   :  { %v3124_v26 = vor.u32 %v3926_v23, %v3121_v25  ;;  %v2705_v28 = vld [vmem:[#allocation8 + $0x70] sm:$0xf0]  ;;  %v3854_v29 = vld [vmem:[#allocation8 + $0x164] sm:$0xf] }
  0x46   :  { %1074 = vmatpush.bf16.msrb.mxu2 %v2912_v59  ;;  %v2708_v30 = vor.u32 %v3822_v27, %v2705_v28  ;;  %v2833_v31 = vld [vmem:[#allocation8 + $0x170] sm:$0xf0]  ;;  %v3890_v33 = vld [vmem:[#allocation8 + $0x284] sm:$0xf] }
  0x47   :  { %1088 = vmatpush.bf16.msrb.mxu3 %v3040_v2  ;;  %v2836_v32 = vor.u32 %v3854_v29, %v2833_v31  ;;  %v2977_v34 = vld [vmem:[#allocation8 + $0x290] sm:$0xf0]  ;;  %v3922_v36 = vld [vmem:[#allocation8 + $0x384] sm:$0xf]  ;;  %v3841_v31 = vld [vmem:[#allocation8 + $0xf4] sm:$0xf0] }
  0x48   :  { %1095 = vmatpush.bf16.msra.mxu0 %v2772_v48  ;;  %1109 = vmatpush.bf16.msra.mxu1 %v2900_v52  ;;  %v2980_v35 = vor.u32 %v3890_v33, %v2977_v34  ;;  %v3105_v37 = vld [vmem:[#allocation8 + $0x390] sm:$0xf0]  ;;  %v3818_v39 = vld [vmem:[#allocation8 + $0x44] sm:$0xf]  ;;  %v149_v33 = vperm.slane %v145_v17, 2 }
  0x49   :  { %v3108_v38 = vor.u32 %v3922_v36, %v3105_v37  ;;  %v2689_v40 = vld [vmem:[#allocation8 + $0x50] sm:$0xf0]  ;;  %v3850_v41 = vld [vmem:[#allocation8 + $0x144] sm:$0xf]  ;;  %v3873_v36 = vld [vmem:[#allocation8 + $0x1f4] sm:$0xf0] }
  0x4a   :  { %1123 = vmatpush.bf16.msra.mxu2 %v3028_v63  ;;  %v2692_v42 = vor.u32 %v3818_v39, %v2689_v40  ;;  %v2817_v43 = vld [vmem:[#allocation8 + $0x150] sm:$0xf0]  ;;  %v3886_v45 = vld [vmem:[#allocation8 + $0x264] sm:$0xf]  ;;  %v150_v37 = vperm.slane %v145_v17, 3 }
  0x4b   :  { %1137 = vmatpush.bf16.msra.mxu3 %v3156_v6  ;;  %v2820_v44 = vor.u32 %v3850_v41, %v2817_v43  ;;  %v2961_v46 = vld [vmem:[#allocation8 + $0x270] sm:$0xf0]  ;;  %v3918_v47 = vld [vmem:[#allocation8 + $0x364] sm:$0xf]  ;;  %v2759_v43 = vld [vmem:[#allocation8 + $0xc8] sm:$0xf] }
  0x4c   :  { %1096 = vmatpush.bf16.msra.mxu0 %v2756_v62  ;;  %1110 = vmatpush.bf16.msra.mxu1 %v2884_v1  ;;  %v2964_v48 = vor.u32 %v3886_v45, %v2961_v46  ;;  %v3089_v49 = vld [vmem:[#allocation8 + $0x370] sm:$0xf0]  ;;  %v3814_v51 = vld [vmem:[#allocation8 + $0x24] sm:$0xf] }
  0x4d   :  { %v3092_v50 = vor.u32 %v3918_v47, %v3089_v49  ;;  %v2673_v52 = vld [vmem:[#allocation8 + $0x30] sm:$0xf0]  ;;  %v3846_v54 = vld [vmem:[#allocation8 + $0x124] sm:$0xf]  ;;  %v2887_v47 = vld [vmem:[#allocation8 + $0x1c8] sm:$0xf] }
  0x4e   :  { %1124 = vmatpush.bf16.msra.mxu2 %v3012_v12  ;;  %v2676_v53 = vor.u32 %v3814_v51, %v2673_v52  ;;  %v2801_v55 = vld [vmem:[#allocation8 + $0x130] sm:$0xf0]  ;;  %v3882_v57 = vld [vmem:[#allocation8 + $0x244] sm:$0xf] }
  0x4f   :  { %1138 = vmatpush.bf16.msra.mxu3 %v3140_v16  ;;  %v2804_v56 = vor.u32 %v3846_v54, %v2801_v55  ;;  %v2945_v58 = vld [vmem:[#allocation8 + $0x250] sm:$0xf0]  ;;  %v3914_v59 = vld [vmem:[#allocation8 + $0x344] sm:$0xf]  ;;  %v3031_v54 = vld [vmem:[#allocation8 + $0x2e8] sm:$0xf] }
  0x50   :  { %1097 = vmatpush.bf16.msra.mxu0 %v2740_v11  ;;  %1111 = vmatpush.bf16.msra.mxu1 %v2868_v13  ;;  %v2948_v60 = vor.u32 %v3882_v57, %v2945_v58  ;;  %v3073_v61 = vld [vmem:[#allocation8 + $0x350] sm:$0xf0]  ;;  %v3810_v63 = vld [vmem:[#allocation8 + $0x4] sm:$0xf]  ;;  %v3905_v55 = vld [vmem:[#allocation8 + $0x2f4] sm:$0xf0] }
  0x51   :  { %v3076_v62 = vor.u32 %v3914_v59, %v3073_v61  ;;  %v2657_v0 = vld [vmem:[#allocation8 + $0x10] sm:$0xf0]  ;;  %v3842_v1 = vld [vmem:[#allocation8 + $0x104] sm:$0xf]  ;;  %v3937_v59 = vld [vmem:[#allocation8 + $0x3f4] sm:$0xf0] }
  0x52   :  { %1125 = vmatpush.bf16.msra.mxu2 %v2996_v24  ;;  %v2660_v2 = vor.u32 %v3810_v63, %v2657_v0  ;;  %v2785_v3 = vld [vmem:[#allocation8 + $0x110] sm:$0xf0]  ;;  %v3878_v5 = vld [vmem:[#allocation8 + $0x224] sm:$0xf]  ;;  %v3833_v61 = vld [vmem:[#allocation8 + $0xb4] sm:$0xf0] }
  0x53   :  { %1139 = vmatpush.bf16.msra.mxu3 %v3124_v26  ;;  %v2788_v4 = vor.u32 %v3842_v1, %v2785_v3  ;;  %v2929_v6 = vld [vmem:[#allocation8 + $0x230] sm:$0xf0]  ;;  %v3910_v7 = vld [vmem:[#allocation8 + $0x324] sm:$0xf]  ;;  %v2871_v0 = vld [vmem:[#allocation8 + $0x1a8] sm:$0xf] }
  0x54   :  { %1098 = vmatpush.bf16.msra.mxu0 %v2724_v19  ;;  %1112 = vmatpush.bf16.msra.mxu1 %v2852_v20  ;;  %v3057_v8 = vld [vmem:[#allocation8 + $0x330] sm:$0xf0]  ;;  %v2932_v9 = vor.u32 %v3878_v5, %v2929_v6  ;;  %v3874_v11 = vld [vmem:[#allocation8 + $0x204] sm:$0xf]  ;;  %v147_v19 = vperm.slane %v145_v17, 0 }
  0x55   :  { %v3060_v10 = vor.u32 %v3910_v7, %v3057_v8  ;;  %v2913_v12 = vld [vmem:[#allocation8 + $0x210] sm:$0xf0]  ;;  %v3906_v14 = vld [vmem:[#allocation8 + $0x304] sm:$0xf]  ;;  %v3865_v1 = vld [vmem:[#allocation8 + $0x1b4] sm:$0xf0] }
  0x56   :  { %1126 = vmatpush.bf16.msra.mxu2 %v2980_v35  ;;  %v2916_v13 = vor.u32 %v3874_v11, %v2913_v12  ;;  %v3041_v15 = vld [vmem:[#allocation8 + $0x310] sm:$0xf0]  ;;  %v2903_v35 = vld [vmem:[#allocation8 + $0x1e8] sm:$0xf]  ;;  %v2872_v12 = vor.u32 %v3865_v1, %v2871_v0  ;;  %v3861_v17 = vld [vmem:[#allocation8 + $0x194] sm:$0xf0] }
  0x57   :  { %1140 = vmatpush.bf16.msra.mxu3 %v3108_v38  ;;  %v3044_v16 = vor.u32 %v3906_v14, %v3041_v15  ;;  %v3015_v8 = vld [vmem:[#allocation8 + $0x2c8] sm:$0xf]  ;;  %v3829_v15 = vld [vmem:[#allocation8 + $0x94] sm:$0xf0] }
  0x58   :  { %1099 = vmatpush.bf16.msra.mxu0 %v2708_v30  ;;  %1113 = vmatpush.bf16.msra.mxu1 %v2836_v32  ;;  %v2775_v30 = vld [vmem:[#allocation8 + $0xe8] sm:$0xf]  ;;  %v3813_v1 = vld [vmem:[#allocation8 + $0x14] sm:$0xf0] }
  0x59   :  { %v2776_v40 = vor.u32 %v3841_v31, %v2775_v30  ;;  %v2727_v14 = vld [vmem:[#allocation8 + $0x88] sm:$0xf] }
  0x5a   :  { %1127 = vmatpush.bf16.msra.mxu2 %v2964_v48  ;;  %v3869_v48 = vld [vmem:[#allocation8 + $0x1d4] sm:$0xf0]  ;;  %v2663_v0 = vld [vmem:[#allocation8 + $0x8] sm:$0xf] }
  0x5b   :  { %1141 = vmatpush.bf16.msra.mxu3 %v3092_v50  ;;  %v2888_v58 = vor.u32 %v3869_v48, %v2887_v47  ;;  %v3889_v47 = vld [vmem:[#allocation8 + $0x274] sm:$0xf0] }
  0x5c   :  { %1100 = vmatpush.bf16.msra.mxu0 %v2692_v42  ;;  %1114 = vmatpush.bf16.msra.mxu1 %v2820_v44  ;;  %v2904_v42 = vor.u32 %v3873_v36, %v2903_v35  ;;  %v3837_v44 = vld [vmem:[#allocation8 + $0xd4] sm:$0xf0]  ;;  %v3111_v36 = vld [vmem:[#allocation8 + $0x388] sm:$0xf] }
  0x5e   :  { %1128 = vmatpush.bf16.msra.mxu2 %v2948_v60  ;;  %v2743_v60 = vld [vmem:[#allocation8 + $0xa8] sm:$0xf] }
  0x5f   :  { %1142 = vmatpush.bf16.msra.mxu3 %v3076_v62  ;;  %v2744_v7 = vor.u32 %v3833_v61, %v2743_v60  ;;  %v3079_v60 = vld [vmem:[#allocation8 + $0x348] sm:$0xf] }
  0x60   :  { %1101 = vmatpush.bf16.msra.mxu0 %v2676_v53  ;;  %1115 = vmatpush.bf16.msra.mxu1 %v2804_v56  ;;  %v2760_v53 = vor.u32 %v3837_v44, %v2759_v43  ;;  %v3159_v56 = vld [vmem:[#allocation8 + $0x3e8] sm:$0xf] }
  0x61   :  { %v3160_v6 = vor.u32 %v3937_v59, %v3159_v56  ;;  %v3885_v59 = vld [vmem:[#allocation8 + $0x254] sm:$0xf0] }
  0x62   :  { %1129 = vmatpush.bf16.msra.mxu2 %v2932_v9  ;;  %v3901_v9 = vld [vmem:[#allocation8 + $0x2d4] sm:$0xf0] }
  0x63   :  { %1143 = vmatpush.bf16.msra.mxu3 %v3060_v10  ;;  %v3143_v10 = vld [vmem:[#allocation8 + $0x3c8] sm:$0xf] }
  0x64   :  { %1102 = vmatpush.bf16.msra.mxu0 %v2660_v2  ;;  %1116 = vmatpush.bf16.msra.mxu1 %v2788_v4  ;;  %v3032_v4 = vor.u32 %v3905_v55, %v3031_v54  ;;  %v2807_v54 = vld [vmem:[#allocation8 + $0x128] sm:$0xf]  ;;  %v3849_v55 = vld [vmem:[#allocation8 + $0x134] sm:$0xf0] }
  0x66   :  { %1130 = vmatpush.bf16.msra.mxu2 %v2916_v13  ;;  %v3933_v13 = vld [vmem:[#allocation8 + $0x3d4] sm:$0xf0] }
  0x67   :  { %1144 = vmatpush.bf16.msra.mxu3 %v3044_v16  ;;  %v2855_v16 = vld [vmem:[#allocation8 + $0x188] sm:$0xf] }
  0xa4   :  { %v202_v18 = vpop.f32.mrf.mxu0  ;;  %v216_v20 = vpop.f32.mrf.mxu1 }
  0xa5   :  { %v203_v22 = vadd.f32 %v202_v18, %v147_v19  ;;  %v217_v23 = vadd.f32 %v216_v20, %v148_v21  ;;  %v3016_v18 = vor.u32 %v3901_v9, %v3015_v8  ;;  %v2728_v20 = vor.u32 %v3829_v15, %v2727_v14  ;;  %v3871_v8 = vld [vmem:[#allocation8 + $0x1ec] sm:$0xf]  ;;  %v2905_v9 = vld [vmem:[#allocation8 + $0x1f8] sm:$0xf0] }
  0xa6   :  { %v2664_v14 = vor.u32 %v3813_v1, %v2663_v0  ;;  %v3823_v0 = vld [vmem:[#allocation8 + $0x6c] sm:$0xf]  ;;  %v2713_v1 = vld [vmem:[#allocation8 + $0x78] sm:$0xf0] }
  0xa7   :  { %v249_v27 = vmax.f32 %v203_v22, 0.0  ;;  %v250_v32 = vmax.f32 %v217_v23, 0.0  ;;  %v3897_v22 = vld [vmem:[#allocation8 + $0x2b4] sm:$0xf0]  ;;  %v2856_v23 = vor.u32 %v3861_v17, %v2855_v16  ;;  %v3063_v16 = vld [vmem:[#allocation8 + $0x328] sm:$0xf] }
  0xa8   :  { %v3913_v17 = vld [vmem:[#allocation8 + $0x334] sm:$0xf0] }
  0xac   :  { %v230_v24 = vpop.f32.mrf.mxu2  ;;  %v244_v25 = vpop.f32.mrf.mxu3 }
  0xad   :  { %v204_v26 = vpop.f32.mrf.mxu0  ;;  %v218_v29 = vpop.f32.mrf.mxu1  ;;  %v231_v45 = vadd.f32 %v230_v24, %v149_v33  ;;  %v245_v49 = vadd.f32 %v244_v25, %v150_v37  ;;  %v3127_v24 = vld [vmem:[#allocation8 + $0x3a8] sm:$0xf]  ;;  %v3929_v25 = vld [vmem:[#allocation8 + $0x3b4] sm:$0xf0] }
  0xae   :  { %v205_v28 = vadd.f32 %v204_v26, %v147_v19  ;;  %v219_v34 = vadd.f32 %v218_v29, %v148_v21  ;;  %v3144_v19 = vor.u32 %v3933_v13, %v3143_v10  ;;  %v2999_v21 = vld [vmem:[#allocation8 + $0x2a8] sm:$0xf]  ;;  %v3857_v29 = vld [vmem:[#allocation8 + $0x174] sm:$0xf0]  ;;  %v3128_v31 = vor.u32 %v3929_v25, %v3127_v24  ;;  %v2889_v24 = vld [vmem:[#allocation8 + $0x1d8] sm:$0xf0] }
  0xaf   :  { %v251_v62 = vmax.f32 %v231_v45, 0.0  ;;  %v252_v2 = vmax.f32 %v245_v49, 0.0  ;;  %v2711_v26 = vld [vmem:[#allocation8 + $0x68] sm:$0xf]  ;;  %v3000_v30 = vor.u32 %v3897_v22, %v2999_v21  ;;  %v3881_v13 = vld [vmem:[#allocation8 + $0x234] sm:$0xf0]  ;;  %v3064_v25 = vor.u32 %v3913_v17, %v3063_v16 }
  0xb0   :  { %v253_v38 = vmax.f32 %v205_v28, 0.0  ;;  %v254_v39 = vmax.f32 %v219_v34, 0.0  ;;  %v2839_v28 = vld [vmem:[#allocation8 + $0x168] sm:$0xf]  ;;  %v2761_v22 = vld [vmem:[#allocation8 + $0xd8] sm:$0xf0] }
  0xb1   :  { %v2840_v35 = vor.u32 %v3857_v29, %v2839_v28  ;;  %v2967_v45 = vld [vmem:[#allocation8 + $0x268] sm:$0xf]  ;;  %v3909_v29 = vld [vmem:[#allocation8 + $0x314] sm:$0xf0]  ;;  %v3851_v16 = vld [vmem:[#allocation8 + $0x14c] sm:$0xf] }
  0xb2   :  { %v4408_v41 = vpack.c.bf16 %v253_v38, %v249_v27  ;;  %v4410_v46 = vpack.c.bf16 %v254_v39, %v250_v32  ;;  %v3825_v27 = vld [vmem:[#allocation8 + $0x74] sm:$0xf0]  ;;  %v2983_v32 = vld [vmem:[#allocation8 + $0x288] sm:$0xf]  ;;  %v2968_v56 = vor.u32 %v3889_v47, %v2967_v45  ;;  %v3899_v45 = vld [vmem:[#allocation8 + $0x2cc] sm:$0xf] }
  0xb3   :  { %v2712_v34 = vor.u32 %v3825_v27, %v2711_v26  ;;  %v2695_v38 = vld [vmem:[#allocation8 + $0x48] sm:$0xf]  ;;  %v3821_v39 = vld [vmem:[#allocation8 + $0x54] sm:$0xf0]  ;;  %v3017_v47 = vld [vmem:[#allocation8 + $0x2d8] sm:$0xf0] }
  0xb4   :  { %v232_v50 = vpop.f32.mrf.mxu2  ;;  %1047 = vmatmul.bf16.vlgmr.msrb.gmra.mxu0 %v4408_v41  ;;  %v246_v52 = vpop.f32.mrf.mxu3  ;;  %1061 = vmatmul.bf16.vlgmr.msrb.gmra.mxu1 %v4410_v46  ;;  %v2696_v48 = vor.u32 %v3821_v39, %v2695_v38  ;;  %v2919_v26 = vld [vmem:[#allocation8 + $0x208] sm:$0xf]  ;;  %v3877_v27 = vld [vmem:[#allocation8 + $0x214] sm:$0xf0]  ;;  %v2745_v38 = vld [vmem:[#allocation8 + $0xb8] sm:$0xf0] }
  0xb5   :  { %v233_v51 = vadd.f32 %v232_v50, %v149_v33  ;;  %1151 = vmatpush.bf16.msrb.mxu0 %v2776_v40  ;;  %v247_v57 = vadd.f32 %v246_v52, %v150_v37  ;;  %1165 = vmatpush.bf16.msrb.mxu1 %v2904_v42  ;;  %v3893_v33 = vld [vmem:[#allocation8 + $0x294] sm:$0xf0]  ;;  %v2823_v40 = vld [vmem:[#allocation8 + $0x148] sm:$0xf]  ;;  %v3863_v39 = vld [vmem:[#allocation8 + $0x1ac] sm:$0xf] }
  0xb6   :  { %v3925_v37 = vld [vmem:[#allocation8 + $0x394] sm:$0xf0]  ;;  %v2984_v43 = vor.u32 %v3893_v33, %v2983_v32  ;;  %v3095_v50 = vld [vmem:[#allocation8 + $0x368] sm:$0xf]  ;;  %v2825_v17 = vld [vmem:[#allocation8 + $0x158] sm:$0xf0] }
  0xb7   :  { %v255_v63 = vmax.f32 %v233_v51, 0.0  ;;  %v256_v3 = vmax.f32 %v247_v57, 0.0  ;;  %v3853_v42 = vld [vmem:[#allocation8 + $0x154] sm:$0xf0]  ;;  %v3112_v44 = vor.u32 %v3925_v37, %v3111_v36  ;;  %v2679_v52 = vld [vmem:[#allocation8 + $0x28] sm:$0xf]  ;;  %v2920_v37 = vor.u32 %v3877_v27, %v2919_v26 }
  0xb8   :  { %v2824_v49 = vor.u32 %v3853_v42, %v2823_v40  ;;  %v3921_v51 = vld [vmem:[#allocation8 + $0x374] sm:$0xf0]  ;;  %v3047_v28 = vld [vmem:[#allocation8 + $0x308] sm:$0xf]  ;;  %v3831_v36 = vld [vmem:[#allocation8 + $0xac] sm:$0xf] }
  0xb9   :  { %v4414_v5 = vpack.c.bf16 %v255_v63, %v251_v62  ;;  %1152 = vmatpush.bf16.msrb.mxu0 %v2760_v53  ;;  %v4416_v11 = vpack.c.bf16 %v256_v3, %v252_v2  ;;  %1166 = vmatpush.bf16.msrb.mxu1 %v2888_v58  ;;  %v3817_v53 = vld [vmem:[#allocation8 + $0x34] sm:$0xf0]  ;;  %v3096_v57 = vor.u32 %v3921_v51, %v3095_v50  ;;  %v2951_v58 = vld [vmem:[#allocation8 + $0x248] sm:$0xf]  ;;  %v2873_v40 = vld [vmem:[#allocation8 + $0x1b8] sm:$0xf0] }
  0xba   :  { %v2680_v61 = vor.u32 %v3817_v53, %v2679_v52  ;;  %v2808_v62 = vor.u32 %v3849_v55, %v2807_v54  ;;  %v3917_v63 = vld [vmem:[#allocation8 + $0x354] sm:$0xf0]  ;;  %v2791_v2 = vld [vmem:[#allocation8 + $0x108] sm:$0xf]  ;;  %v3048_v42 = vor.u32 %v3909_v29, %v3047_v28  ;;  %v3931_v50 = vld [vmem:[#allocation8 + $0x3cc] sm:$0xf] }
  0xbb   :  { %1075 = vmatmul.bf16.vlgmr.msrb.gmra.mxu2 %v4414_v5  ;;  %1089 = vmatmul.bf16.vlgmr.msrb.gmra.mxu3 %v4416_v11  ;;  %v3845_v3 = vld [vmem:[#allocation8 + $0x114] sm:$0xf0]  ;;  %v3080_v10 = vor.u32 %v3917_v63, %v3079_v60  ;;  %v3145_v51 = vld [vmem:[#allocation8 + $0x3d8] sm:$0xf0]  ;;  %v3827_v52 = vld [vmem:[#allocation8 + $0x8c] sm:$0xf] }
  0xbc   :  { %1179 = vmatpush.bf16.msrb.mxu2 %v3032_v4  ;;  %1193 = vmatpush.bf16.msrb.mxu3 %v3160_v6  ;;  %v3839_v4 = vld [vmem:[#allocation8 + $0xec] sm:$0xf]  ;;  %v2952_v6 = vor.u32 %v3885_v59, %v2951_v58  ;;  %v2792_v15 = vor.u32 %v3845_v3, %v2791_v2  ;;  %v2729_v53 = vld [vmem:[#allocation8 + $0x98] sm:$0xf0] }
  0xbd   :  { %1153 = vmatpush.bf16.msrb.mxu0 %v2744_v7  ;;  %1167 = vmatpush.bf16.msrb.mxu1 %v2872_v12  ;;  %v2777_v7 = vld [vmem:[#allocation8 + $0xf8] sm:$0xf0]  ;;  %v2935_v12 = vld [vmem:[#allocation8 + $0x228] sm:$0xf]  ;;  %v3859_v54 = vld [vmem:[#allocation8 + $0x18c] sm:$0xf]  ;;  %v2732_v60 = vor.u32 %v3827_v52, %v2729_v53 }
  0xbe   :  { %v2936_v21 = vor.u32 %v3881_v13, %v2935_v12  ;;  %v2857_v55 = vld [vmem:[#allocation8 + $0x198] sm:$0xf0]  ;;  %v3895_v58 = vld [vmem:[#allocation8 + $0x2ac] sm:$0xf] }
  0xbf   :  { %v3001_v59 = vld [vmem:[#allocation8 + $0x2b8] sm:$0xf0]  ;;  %v3855_v2 = vld [vmem:[#allocation8 + $0x16c] sm:$0xf] }
  0xc0   :  { %1180 = vmatpush.bf16.msrb.mxu2 %v3016_v18  ;;  %1194 = vmatpush.bf16.msrb.mxu3 %v3144_v19  ;;  %v2780_v18 = vor.u32 %v3839_v4, %v2777_v7  ;;  %v2908_v19 = vor.u32 %v3871_v8, %v2905_v9  ;;  %v3129_v63 = vld [vmem:[#allocation8 + $0x3b8] sm:$0xf0]  ;;  %v3004_v4 = vor.u32 %v3895_v58, %v3001_v59  ;;  %v3891_v7 = vld [vmem:[#allocation8 + $0x28c] sm:$0xf] }
  0xc1   :  { %1154 = vmatpush.bf16.msrb.mxu0 %v2728_v20  ;;  %1168 = vmatpush.bf16.msrb.mxu1 %v2856_v23  ;;  %v3835_v20 = vld [vmem:[#allocation8 + $0xcc] sm:$0xf]  ;;  %v2841_v3 = vld [vmem:[#allocation8 + $0x178] sm:$0xf0]  ;;  %v2716_v9 = vor.u32 %v3823_v0, %v2713_v1 }
  0xc2   :  { %v3867_v23 = vld [vmem:[#allocation8 + $0x1cc] sm:$0xf]  ;;  %v2764_v32 = vor.u32 %v3835_v20, %v2761_v22  ;;  %v2985_v8 = vld [vmem:[#allocation8 + $0x298] sm:$0xf0] }
  0xc3   :  { %v2892_v33 = vor.u32 %v3867_v23, %v2889_v24  ;;  %v3923_v12 = vld [vmem:[#allocation8 + $0x38c] sm:$0xf]  ;;  %v3113_v13 = vld [vmem:[#allocation8 + $0x398] sm:$0xf0]  ;;  %v2828_v23 = vor.u32 %v3851_v16, %v2825_v17  ;;  %v3956_v16 = vld [vmem:[#allocation11 + $0x8c] sm:$0xf0] }
  0xc4   :  { %1181 = vmatpush.bf16.msrb.mxu2 %v3000_v30  ;;  %1103 = vmatmul.bf16.vlgmr.msra.gmra.mxu0 %v4408_v41  ;;  %v3903_v30 = vld [vmem:[#allocation8 + $0x2ec] sm:$0xf]  ;;  %v2681_v27 = vld [vmem:[#allocation8 + $0x38] sm:$0xf0] }
  0xc5   :  { %1195 = vmatpush.bf16.msrb.mxu3 %v3128_v31  ;;  %1117 = vmatmul.bf16.vlgmr.msra.gmra.mxu1 %v4410_v46  ;;  %v3033_v31 = vld [vmem:[#allocation8 + $0x2f8] sm:$0xf0]  ;;  %v3887_v20 = vld [vmem:[#allocation8 + $0x26c] sm:$0xf] }
  0xc6   :  { %1155 = vmatpush.bf16.msrb.mxu0 %v2712_v34  ;;  %1169 = vmatpush.bf16.msrb.mxu1 %v2840_v35  ;;  %v3935_v34 = vld [vmem:[#allocation8 + $0x3ec] sm:$0xf]  ;;  %v3161_v35 = vld [vmem:[#allocation8 + $0x3f8] sm:$0xf0] }
  0xc7   :  { %v3919_v24 = vld [vmem:[#allocation8 + $0x36c] sm:$0xf]  ;;  %v2809_v29 = vld [vmem:[#allocation8 + $0x138] sm:$0xf0] }
  0xc8   :  { %1182 = vmatpush.bf16.msrb.mxu2 %v2984_v43  ;;  %v3036_v43 = vor.u32 %v3903_v30, %v3033_v31  ;;  %v3815_v26 = vld [vmem:[#allocation8 + $0x2c] sm:$0xf]  ;;  %v2921_v1 = vld [vmem:[#allocation8 + $0x218] sm:$0xf0] }
  0xc9   :  { %1196 = vmatpush.bf16.msrb.mxu3 %v3112_v44  ;;  %v3164_v44 = vor.u32 %v3935_v34, %v3161_v35  ;;  %v3847_v28 = vld [vmem:[#allocation8 + $0x12c] sm:$0xf]  ;;  %v2684_v35 = vor.u32 %v3815_v26, %v2681_v27  ;;  %v3183_v26 = vld [vmem:[#allocation11 + $0x20] sm:$0xf]  ;;  %v3944_v27 = vld [vmem:[#allocation11 + $0x2c] sm:$0xf0] }
  0xca   :  { %1156 = vmatpush.bf16.msrb.mxu0 %v2696_v48  ;;  %1170 = vmatpush.bf16.msrb.mxu1 %v2824_v49  ;;  %v2748_v48 = vor.u32 %v3831_v36, %v2745_v38  ;;  %v2876_v49 = vor.u32 %v3863_v39, %v2873_v40  ;;  %v3915_v34 = vld [vmem:[#allocation8 + $0x34c] sm:$0xf]  ;;  %v2812_v36 = vor.u32 %v3847_v28, %v2809_v29  ;;  %v2665_v39 = vld [vmem:[#allocation8 + $0x18] sm:$0xf0]  ;;  %v3940_v29 = vld [vmem:[#allocation11 + $0xc] sm:$0xf0] }
  0xcb   :  { %1131 = vmatmul.bf16.vlgmr.msra.gmra.mxu2 %v4414_v5  ;;  %1145 = vmatmul.bf16.vlgmr.msra.gmra.mxu3 %v4416_v11  ;;  %v3811_v38 = vld [vmem:[#allocation8 + $0xc] sm:$0xf]  ;;  %v3184_v28 = vor.u32 %v3944_v27, %v3183_v26  ;;  %v3377_v26 = vld [vmem:[#allocation11 + $0x1b0] sm:$0xf0] }
  0xcc   :  { %1183 = vmatpush.bf16.msrb.mxu2 %v2968_v56  ;;  %v3020_v56 = vor.u32 %v3899_v45, %v3017_v47  ;;  %v3843_v40 = vld [vmem:[#allocation8 + $0x10c] sm:$0xf]  ;;  %v3968_v45 = vld [vmem:[#allocation11 + $0xec] sm:$0xf0]  ;;  %v3407_v47 = vld [vmem:[#allocation11 + $0x1e0] sm:$0xf]  ;;  %v2668_v52 = vor.u32 %v3811_v38, %v2665_v39 }
  0xcd   :  { %1197 = vmatpush.bf16.msrb.mxu3 %v3096_v57  ;;  %v3148_v57 = vor.u32 %v3931_v50, %v3145_v51  ;;  %v3879_v50 = vld [vmem:[#allocation8 + $0x22c] sm:$0xf]  ;;  %v2937_v51 = vld [vmem:[#allocation8 + $0x238] sm:$0xf0]  ;;  %v3962_v38 = vld [vmem:[#allocation11 + $0xc4] sm:$0xf] }
  0xce   :  { %1157 = vmatpush.bf16.msrb.mxu0 %v2680_v61  ;;  %1171 = vmatpush.bf16.msrb.mxu1 %v2808_v62  ;;  %v2860_v61 = vor.u32 %v3859_v54, %v2857_v55  ;;  %v3927_v62 = vld [vmem:[#allocation8 + $0x3ac] sm:$0xf]  ;;  %v3065_v55 = vld [vmem:[#allocation8 + $0x338] sm:$0xf0]  ;;  %v2940_v59 = vor.u32 %v3879_v50, %v2937_v51  ;;  %v3265_v39 = vld [vmem:[#allocation11 + $0xd0] sm:$0xf0] }
  0xcf   :  { %v3911_v54 = vld [vmem:[#allocation8 + $0x32c] sm:$0xf]  ;;  %v3958_v50 = vld [vmem:[#allocation11 + $0xa4] sm:$0xf]  ;;  %v3249_v51 = vld [vmem:[#allocation11 + $0xb0] sm:$0xf0] }
  0xd0   :  { %1184 = vmatpush.bf16.msrb.mxu2 %v2952_v6  ;;  %v3132_v6 = vor.u32 %v3927_v62, %v3129_v63  ;;  %v3996_v62 = vld [vmem:[#allocation11 + $0x1cc] sm:$0xf0]  ;;  %v3068_v63 = vor.u32 %v3911_v54, %v3065_v55  ;;  %v3875_v0 = vld [vmem:[#allocation8 + $0x20c] sm:$0xf]  ;;  %v3503_v55 = vld [vmem:[#allocation11 + $0x2a0] sm:$0xf] }
  0xd1   :  { %1198 = vmatpush.bf16.msrb.mxu3 %v3080_v10  ;;  %v2844_v10 = vor.u32 %v3855_v2, %v2841_v3  ;;  %v3907_v2 = vld [vmem:[#allocation8 + $0x30c] sm:$0xf]  ;;  %v3049_v3 = vld [vmem:[#allocation8 + $0x318] sm:$0xf0]  ;;  %v3976_v54 = vld [vmem:[#allocation11 + $0x12c] sm:$0xf0] }
  0xd2   :  { %1158 = vmatpush.bf16.msrb.mxu0 %v2664_v14  ;;  %1172 = vmatpush.bf16.msrb.mxu1 %v2792_v15  ;;  %v3819_v14 = vld [vmem:[#allocation8 + $0x4c] sm:$0xf]  ;;  %v2697_v15 = vld [vmem:[#allocation8 + $0x58] sm:$0xf0] }
  0xd3   :  { %v2700_v22 = vor.u32 %v3819_v14, %v2697_v15  ;;  %v3231_v15 = vld [vmem:[#allocation11 + $0x80] sm:$0xf] }
  0xd4   :  { %1185 = vmatpush.bf16.msrb.mxu2 %v2936_v21  ;;  %v2969_v21 = vld [vmem:[#allocation8 + $0x278] sm:$0xf0] }
  0xd5   :  { %1199 = vmatpush.bf16.msrb.mxu3 %v3064_v25  ;;  %1159 = vmatmul.bf16.vlgmr.msrb.gmra.mxu0 %v4408_v41  ;;  %v3097_v25 = vld [vmem:[#allocation8 + $0x378] sm:$0xf0]  ;;  %v2972_v30 = vor.u32 %v3887_v20, %v2969_v21  ;;  %v3232_v20 = vor.u32 %v3956_v16, %v3231_v15  ;;  %v3952_v21 = vld [vmem:[#allocation11 + $0x6c] sm:$0xf0]  ;;  %v3946_v15 = vld [vmem:[#allocation11 + $0x44] sm:$0xf] }
  0xd6   :  { %1207 = vmatpush.bf16.msra.mxu0 %v2780_v18  ;;  %1221 = vmatpush.bf16.msra.mxu1 %v2908_v19  ;;  %v2988_v18 = vor.u32 %v3891_v7, %v2985_v8  ;;  %v3116_v19 = vor.u32 %v3923_v12, %v3113_v13  ;;  %v3100_v31 = vor.u32 %v3919_v24, %v3097_v25  ;;  %v3247_v8 = vld [vmem:[#allocation11 + $0xa0] sm:$0xf]  ;;  %v3992_v13 = vld [vmem:[#allocation11 + $0x1ac] sm:$0xf0]  ;;  %v3201_v16 = vld [vmem:[#allocation11 + $0x50] sm:$0xf0] }
  0xd7   :  { %1173 = vmatmul.bf16.vlgmr.msrb.gmra.mxu1 %v4410_v46  ;;  %v2924_v7 = vor.u32 %v3875_v0, %v2921_v1  ;;  %v3375_v12 = vld [vmem:[#allocation11 + $0x1a0] sm:$0xf]  ;;  %v3948_v24 = vld [vmem:[#allocation11 + $0x4c] sm:$0xf0] }
  0xd8   :  { %1186 = vmatpush.bf16.msrb.mxu2 %v2920_v37  ;;  %v3081_v37 = vld [vmem:[#allocation8 + $0x358] sm:$0xf0]  ;;  %v3376_v17 = vor.u32 %v3992_v13, %v3375_v12  ;;  %v3487_v0 = vld [vmem:[#allocation11 + $0x280] sm:$0xf]  ;;  %v4016_v13 = vld [vmem:[#allocation11 + $0x26c] sm:$0xf0] }
  0xd9   :  { %1200 = vmatpush.bf16.msrb.mxu3 %v3048_v42  ;;  %v2793_v42 = vld [vmem:[#allocation8 + $0x118] sm:$0xf0]  ;;  %v3471_v12 = vld [vmem:[#allocation11 + $0x260] sm:$0xf] }
  0xda   :  { %1208 = vmatpush.bf16.msra.mxu0 %v2764_v32  ;;  %1222 = vmatpush.bf16.msra.mxu1 %v2892_v33  ;;  %v3883_v32 = vld [vmem:[#allocation8 + $0x24c] sm:$0xf]  ;;  %v2953_v33 = vld [vmem:[#allocation8 + $0x258] sm:$0xf0]  ;;  %v2796_v53 = vor.u32 %v3843_v40, %v2793_v42  ;;  %v3268_v42 = vor.u32 %v3962_v38, %v3265_v39 }
  0xdb   :  { %1187 = vmatmul.bf16.vlgmr.msrb.gmra.mxu2 %v4414_v5 }
  0xdc   :  { %1235 = vmatpush.bf16.msra.mxu2 %v3036_v43  ;;  %1201 = vmatmul.bf16.vlgmr.msrb.gmra.mxu3 %v4416_v11  ;;  %v3279_v43 = vld [vmem:[#allocation11 + $0xe0] sm:$0xf] }
  0xdd   :  { %1249 = vmatpush.bf16.msra.mxu3 %v3164_v44  ;;  %v2956_v44 = vor.u32 %v3883_v32, %v2953_v33  ;;  %v3343_v33 = vld [vmem:[#allocation11 + $0x160] sm:$0xf] }
  0xde   :  { %1209 = vmatpush.bf16.msra.mxu0 %v2748_v48  ;;  %1223 = vmatpush.bf16.msra.mxu1 %v2876_v49  ;;  %v4000_v48 = vld [vmem:[#allocation11 + $0x1ec] sm:$0xf0]  ;;  %v3084_v49 = vor.u32 %v3915_v34, %v3081_v37 }
  0xdf   :  { %v3408_v58 = vor.u32 %v4000_v48, %v3407_v47  ;;  %v3984_v34 = vld [vmem:[#allocation11 + $0x16c] sm:$0xf0] }
  0xe0   :  { %1236 = vmatpush.bf16.msra.mxu2 %v3020_v56  ;;  %v3280_v56 = vor.u32 %v3968_v45, %v3279_v43  ;;  %v4032_v37 = vld [vmem:[#allocation11 + $0x2ec] sm:$0xf0]  ;;  %v3327_v43 = vld [vmem:[#allocation11 + $0x140] sm:$0xf] }
  0xe1   :  { %1250 = vmatpush.bf16.msra.mxu3 %v3148_v57  ;;  %v3263_v57 = vld [vmem:[#allocation11 + $0xc0] sm:$0xf]  ;;  %v4028_v48 = vld [vmem:[#allocation11 + $0x2cc] sm:$0xf0] }
  0xe2   :  { %1210 = vmatpush.bf16.msra.mxu0 %v2732_v60  ;;  %1224 = vmatpush.bf16.msra.mxu1 %v2860_v61  ;;  %v3964_v60 = vld [vmem:[#allocation11 + $0xcc] sm:$0xf0]  ;;  %v3391_v61 = vld [vmem:[#allocation11 + $0x1c0] sm:$0xf] }
  0xe3   :  { %v3519_v45 = vld [vmem:[#allocation11 + $0x2c0] sm:$0xf] }
  0xe4   :  { %1237 = vmatpush.bf16.msra.mxu2 %v3004_v4  ;;  %v3264_v4 = vor.u32 %v3964_v60, %v3263_v57  ;;  %v4024_v57 = vld [vmem:[#allocation11 + $0x2ac] sm:$0xf0] }
  0xe5   :  { %1251 = vmatpush.bf16.msra.mxu3 %v3132_v6  ;;  %v3392_v6 = vor.u32 %v3996_v62, %v3391_v61  ;;  %v3504_v60 = vor.u32 %v4024_v57, %v3503_v55  ;;  %v3295_v62 = vld [vmem:[#allocation11 + $0x100] sm:$0xf]  ;;  %v3978_v55 = vld [vmem:[#allocation11 + $0x144] sm:$0xf] }
  0xe6   :  { %1211 = vmatpush.bf16.msra.mxu0 %v2716_v9  ;;  %1225 = vmatpush.bf16.msra.mxu1 %v2844_v10  ;;  %v3960_v9 = vld [vmem:[#allocation11 + $0xac] sm:$0xf0]  ;;  %v3052_v10 = vor.u32 %v3907_v2, %v3049_v3  ;;  %v3950_v3 = vld [vmem:[#allocation11 + $0x64] sm:$0xf] }
  0xe7   :  { %v3248_v14 = vor.u32 %v3960_v9, %v3247_v8  ;;  %v4020_v2 = vld [vmem:[#allocation11 + $0x28c] sm:$0xf0]  ;;  %v3998_v8 = vld [vmem:[#allocation11 + $0x1e4] sm:$0xf]  ;;  %v3409_v9 = vld [vmem:[#allocation11 + $0x1f0] sm:$0xf0] }
  0xe8   :  { %1238 = vmatpush.bf16.msra.mxu2 %v2988_v18  ;;  %v3359_v18 = vld [vmem:[#allocation11 + $0x180] sm:$0xf]  ;;  %v4026_v57 = vld [vmem:[#allocation11 + $0x2c4] sm:$0xf] }
  0xe9   :  { %1252 = vmatpush.bf16.msra.mxu3 %v3116_v19  ;;  %v3988_v19 = vld [vmem:[#allocation11 + $0x18c] sm:$0xf0] }
  0xea   :  { %1212 = vmatpush.bf16.msra.mxu0 %v2700_v22  ;;  %1226 = vmatpush.bf16.msra.mxu1 %v2828_v23  ;;  %v3199_v23 = vld [vmem:[#allocation11 + $0x40] sm:$0xf] }
  0xeb   :  { %v3200_v25 = vor.u32 %v3948_v24, %v3199_v23  ;;  %v3185_v23 = vld [vmem:[#allocation11 + $0x30] sm:$0xf0]  ;;  %v3990_v24 = vld [vmem:[#allocation11 + $0x1a4] sm:$0xf] }
  0xec   :  { %1239 = vmatpush.bf16.msra.mxu2 %v2972_v30  ;;  %v3380_v27 = vor.u32 %v3990_v24, %v3377_v26 }
  0xed   :  { %1253 = vmatpush.bf16.msra.mxu3 %v3100_v31  ;;  %v3281_v31 = vld [vmem:[#allocation11 + $0xf0] sm:$0xf0] }
  0xee   :  { %1213 = vmatpush.bf16.msra.mxu0 %v2684_v35  ;;  %1227 = vmatpush.bf16.msra.mxu1 %v2812_v36  ;;  %v3535_v35 = vld [vmem:[#allocation11 + $0x2e0] sm:$0xf]  ;;  %v3344_v36 = vor.u32 %v3984_v34, %v3343_v33  ;;  %v3361_v33 = vld [vmem:[#allocation11 + $0x190] sm:$0xf0] }
  0xef   :  { %v3536_v40 = vor.u32 %v4032_v37, %v3535_v35  ;;  %v3423_v35 = vld [vmem:[#allocation11 + $0x200] sm:$0xf] }
  0xf0   :  { %1240 = vmatpush.bf16.msra.mxu2 %v2956_v44  ;;  %v3980_v44 = vld [vmem:[#allocation11 + $0x14c] sm:$0xf0]  ;;  %v3663_v37 = vld [vmem:[#allocation11 + $0x3e0] sm:$0xf] }
  0xf1   :  { %1254 = vmatpush.bf16.msra.mxu3 %v3084_v49  ;;  %v3328_v47 = vor.u32 %v3980_v44, %v3327_v43  ;;  %v3520_v49 = vor.u32 %v4028_v48, %v3519_v45  ;;  %v3345_v43 = vld [vmem:[#allocation11 + $0x170] sm:$0xf0] }
  0xf2   :  { %1214 = vmatpush.bf16.msra.mxu0 %v2668_v52  ;;  %1228 = vmatpush.bf16.msra.mxu1 %v2796_v53  ;;  %v3252_v52 = vor.u32 %v3958_v50, %v3249_v51  ;;  %v3311_v53 = vld [vmem:[#allocation11 + $0x120] sm:$0xf]  ;;  %v3537_v48 = vld [vmem:[#allocation11 + $0x2f0] sm:$0xf0]  ;;  %v4432_v51 = vld [vmem:[#allocation10] sm:$0xf] }
  0xf4   :  { %1241 = vmatpush.bf16.msra.mxu2 %v2940_v59  ;;  %v3233_v59 = vld [vmem:[#allocation11 + $0x90] sm:$0xf0] }
  0xf5   :  { %1255 = vmatpush.bf16.msra.mxu3 %v3068_v63  ;;  %1215 = vmatmul.bf16.vlgmr.msra.gmra.mxu0 %v4408_v41  ;;  %v3215_v41 = vld [vmem:[#allocation11 + $0x60] sm:$0xf]  ;;  %v3972_v63 = vld [vmem:[#allocation11 + $0x10c] sm:$0xf0] }
  0xf6   :  { %2053 = vmatpush.bf16.msrb.mxu0 %v3280_v56  ;;  %2067 = vmatpush.bf16.msrb.mxu1 %v3408_v58  ;;  %v3216_v22 = vor.u32 %v3952_v21, %v3215_v41  ;;  %v3312_v56 = vor.u32 %v3976_v54, %v3311_v53  ;;  %v3954_v58 = vld [vmem:[#allocation11 + $0x84] sm:$0xf]  ;;  %v3296_v1 = vor.u32 %v3972_v63, %v3295_v62  ;;  %v3455_v41 = vld [vmem:[#allocation11 + $0x240] sm:$0xf]  ;;  %v4012_v21 = vld [vmem:[#allocation11 + $0x24c] sm:$0xf0] }
  0xf7   :  { %1229 = vmatmul.bf16.vlgmr.msra.gmra.mxu1 %v4410_v46  ;;  %v3360_v46 = vor.u32 %v3988_v19, %v3359_v18  ;;  %v3236_v61 = vor.u32 %v3954_v58, %v3233_v59  ;;  %v3204_v18 = vor.u32 %v3946_v15, %v3201_v16  ;;  %v3393_v19 = vld [vmem:[#allocation11 + $0x1d0] sm:$0xf0]  ;;  %v4060_v53 = vld [vmem:[#allocation11 + $0x3cc] sm:$0xf0]  ;;  %v3631_v62 = vld [vmem:[#allocation11 + $0x3a0] sm:$0xf] }
  0xf8   :  { %1242 = vmatpush.bf16.msra.mxu2 %v2924_v7  ;;  %v3521_v59 = vld [vmem:[#allocation11 + $0x2d0] sm:$0xf0]  ;;  %v4056_v63 = vld [vmem:[#allocation11 + $0x3ac] sm:$0xf0]  ;;  %v3970_v15 = vld [vmem:[#allocation11 + $0x104] sm:$0xf] }
  0xf9   :  { %1256 = vmatpush.bf16.msra.mxu3 %v3052_v10  ;;  %v3412_v10 = vor.u32 %v3998_v8, %v3409_v9  ;;  %v3615_v9 = vld [vmem:[#allocation11 + $0x380] sm:$0xf]  ;;  %v3297_v16 = vld [vmem:[#allocation11 + $0x110] sm:$0xf0] }
  0xfa   :  { %2054 = vmatpush.bf16.msrb.mxu0 %v3264_v4  ;;  %2068 = vmatpush.bf16.msrb.mxu1 %v3392_v6  ;;  %v3217_v4 = vld [vmem:[#allocation11 + $0x70] sm:$0xf0]  ;;  %v3488_v6 = vor.u32 %v4020_v2, %v3487_v0  ;;  %v3974_v2 = vld [vmem:[#allocation11 + $0x124] sm:$0xf] }
  0xfb   :  { %1243 = vmatmul.bf16.vlgmr.msra.gmra.mxu2 %v4414_v5  ;;  %v3167_v5 = vld [vmem:[#allocation11] sm:$0xf]  ;;  %v3220_v7 = vor.u32 %v3950_v3, %v3217_v4  ;;  %v3313_v3 = vld [vmem:[#allocation11 + $0x130] sm:$0xf0]  ;;  %v4022_v4 = vld [vmem:[#allocation11 + $0x2a4] sm:$0xf] }
  0xfc   :  { %1257 = vmatmul.bf16.vlgmr.msra.gmra.mxu3 %v4416_v11  ;;  %v3168_v30 = vor.u32 %v3940_v29, %v3167_v5  ;;  %v3966_v11 = vld [vmem:[#allocation11 + $0xe4] sm:$0xf]  ;;  %2081 = vmatpush.bf16.msrb.mxu2 %v3536_v40  ;;  %v4008_v5 = vld [vmem:[#allocation11 + $0x22c] sm:$0xf0] }
  0xfd   :  { %v3284_v32 = vor.u32 %v3966_v11, %v3281_v31  ;;  %v3169_v11 = vld [vmem:[#allocation11 + $0x10] sm:$0xf0]  ;;  %v3986_v31 = vld [vmem:[#allocation11 + $0x184] sm:$0xf]  ;;  %v4064_v40 = vld [vmem:[#allocation11 + $0x3ec] sm:$0xf0] }
  0xfe   :  { %2055 = vmatpush.bf16.msrb.mxu0 %v3248_v14  ;;  %2069 = vmatpush.bf16.msrb.mxu1 %v3376_v17  ;;  %v3472_v14 = vor.u32 %v4016_v13, %v3471_v12  ;;  %v3994_v17 = vld [vmem:[#allocation11 + $0x1c4] sm:$0xf]  ;;  %v3364_v34 = vor.u32 %v3986_v31, %v3361_v33  ;;  %v3664_v44 = vor.u32 %v4064_v40, %v3663_v37 }
  0xff   :  { %v4010_v33 = vld [vmem:[#allocation11 + $0x244] sm:$0xf] }
 0x100   :  { %2082 = vmatpush.bf16.msrb.mxu2 %v3520_v49  ;;  %2095 = vmatpush.bf16.msrb.mxu3 %v3664_v44  ;;  %v3567_v44 = vld [vmem:[#allocation11 + $0x320] sm:$0xf] }
 0x102   :  { %2056 = vmatpush.bf16.msrb.mxu0 %v3232_v20  ;;  %2070 = vmatpush.bf16.msrb.mxu1 %v3360_v46  ;;  %v3396_v20 = vor.u32 %v3994_v17, %v3393_v19  ;;  %v3456_v46 = vor.u32 %v4012_v21, %v3455_v41  ;;  %v4018_v17 = vld [vmem:[#allocation11 + $0x284] sm:$0xf]  ;;  %v3300_v19 = vor.u32 %v3970_v15, %v3297_v16  ;;  %v3961_v16 = vld [vmem:[#allocation11 + $0xb4] sm:$0xf0] }
 0x104   :  { %2083 = vmatpush.bf16.msrb.mxu2 %v3504_v60  ;;  %v3524_v60 = vor.u32 %v4026_v57, %v3521_v59  ;;  %v3271_v57 = vld [vmem:[#allocation11 + $0xc8] sm:$0xf]  ;;  %v3965_v59 = vld [vmem:[#allocation11 + $0xd4] sm:$0xf0] }
 0x106   :  { %2057 = vmatpush.bf16.msrb.mxu0 %v3216_v22  ;;  %2071 = vmatpush.bf16.msrb.mxu1 %v3344_v36  ;;  %v3942_v22 = vld [vmem:[#allocation11 + $0x24] sm:$0xf]  ;;  %v4004_v36 = vld [vmem:[#allocation11 + $0x20c] sm:$0xf0] }
 0x107   :  { %v3424_v39 = vor.u32 %v4004_v36, %v3423_v35 }
 0x108   :  { %2084 = vmatpush.bf16.msrb.mxu2 %v3488_v6  ;;  %v3316_v6 = vor.u32 %v3974_v2, %v3313_v3  ;;  %v3425_v2 = vld [vmem:[#allocation11 + $0x210] sm:$0xf0]  ;;  %v4062_v3 = vld [vmem:[#allocation11 + $0x3e4] sm:$0xf] }
 0x10a   :  { %2058 = vmatpush.bf16.msrb.mxu0 %v3200_v25  ;;  %2072 = vmatpush.bf16.msrb.mxu1 %v3328_v47  ;;  %v3188_v25 = vor.u32 %v3942_v22, %v3185_v23  ;;  %v4030_v47 = vld [vmem:[#allocation11 + $0x2e4] sm:$0xf]  ;;  %v4048_v22 = vld [vmem:[#allocation11 + $0x36c] sm:$0xf0] }
 0x10b   :  { %v3540_v50 = vor.u32 %v4030_v47, %v3537_v48  ;;  %v3969_v48 = vld [vmem:[#allocation11 + $0xf4] sm:$0xf0] }
 0x10c   :  { %2085 = vmatpush.bf16.msrb.mxu2 %v3472_v14 }
 0x10e   :  { %2059 = vmatpush.bf16.msrb.mxu0 %v3184_v28  ;;  %2073 = vmatpush.bf16.msrb.mxu1 %v3312_v56  ;;  %v3439_v28 = vld [vmem:[#allocation11 + $0x220] sm:$0xf]  ;;  %v3329_v56 = vld [vmem:[#allocation11 + $0x150] sm:$0xf0] }
 0x10f   :  { %v3440_v29 = vor.u32 %v4008_v5, %v3439_v28  ;;  %v3332_v58 = vor.u32 %v3978_v55, %v3329_v56  ;;  %v3473_v28 = vld [vmem:[#allocation11 + $0x270] sm:$0xf0] }
 0x110   :  { %2086 = vmatpush.bf16.msrb.mxu2 %v3456_v46  ;;  %v3599_v46 = vld [vmem:[#allocation11 + $0x360] sm:$0xf] }
 0x111   :  { %v3600_v26 = vor.u32 %v4048_v22, %v3599_v46  ;;  %v3239_v46 = vld [vmem:[#allocation11 + $0x88] sm:$0xf] }
 0x112   :  { %2060 = vmatpush.bf16.msrb.mxu0 %v3168_v30  ;;  %2074 = vmatpush.bf16.msrb.mxu1 %v3296_v1  ;;  %v3938_v30 = vld [vmem:[#allocation11 + $0x4] sm:$0xf]  ;;  %v3632_v1 = vor.u32 %v4056_v63, %v3631_v62 }
 0x114   :  { %2087 = vmatpush.bf16.msrb.mxu2 %v3440_v29 }
 0x116   :  { %2109 = vmatpush.bf16.msra.mxu0 %v3284_v32  ;;  %2123 = vmatpush.bf16.msra.mxu1 %v3412_v10  ;;  %v3172_v32 = vor.u32 %v3938_v30, %v3169_v11  ;;  %v4052_v10 = vld [vmem:[#allocation11 + $0x38c] sm:$0xf0]  ;;  %v3583_v30 = vld [vmem:[#allocation11 + $0x340] sm:$0xf] }
 0x117   :  { %v3616_v14 = vor.u32 %v4052_v10, %v3615_v9  ;;  %v4044_v11 = vld [vmem:[#allocation11 + $0x34c] sm:$0xf0]  ;;  %v3272_v10 = vor.u32 %v3965_v59, %v3271_v57 }
 0x118   :  { %2088 = vmatpush.bf16.msrb.mxu2 %v3424_v39 }
 0x11a   :  { %2110 = vmatpush.bf16.msra.mxu0 %v3268_v42  ;;  %2124 = vmatpush.bf16.msra.mxu1 %v3396_v20  ;;  %v3982_v42 = vld [vmem:[#allocation11 + $0x164] sm:$0xf]  ;;  %v3489_v20 = vld [vmem:[#allocation11 + $0x290] sm:$0xf0] }
 0x11b   :  { %v3348_v45 = vor.u32 %v3982_v42, %v3345_v43  ;;  %v3492_v21 = vor.u32 %v4018_v17, %v3489_v20  ;;  %v3287_v43 = vld [vmem:[#allocation11 + $0xe8] sm:$0xf]  ;;  %v4058_v17 = vld [vmem:[#allocation11 + $0x3c4] sm:$0xf] }
 0x11c   :  { %2137 = vmatpush.bf16.msra.mxu2 %v3540_v50  ;;  %v4006_v50 = vld [vmem:[#allocation11 + $0x224] sm:$0xf] }
 0x11e   :  { %2111 = vmatpush.bf16.msra.mxu0 %v3252_v52  ;;  %2125 = vmatpush.bf16.msra.mxu1 %v3380_v27  ;;  %v3647_v52 = vld [vmem:[#allocation11 + $0x3c0] sm:$0xf]  ;;  %v4014_v27 = vld [vmem:[#allocation11 + $0x264] sm:$0xf] }
 0x11f   :  { %v3648_v54 = vor.u32 %v4060_v53, %v3647_v52  ;;  %v3476_v5 = vor.u32 %v4014_v27, %v3473_v28  ;;  %v3441_v52 = vld [vmem:[#allocation11 + $0x230] sm:$0xf0] }
 0x120   :  { %2138 = vmatpush.bf16.msra.mxu2 %v3524_v60  ;;  %v3551_v60 = vld [vmem:[#allocation11 + $0x300] sm:$0xf] }
 0x121   :  { %2096 = vmatpush.bf16.msrb.mxu3 %v3648_v54  ;;  %v3444_v54 = vor.u32 %v4006_v50, %v3441_v52  ;;  %v3997_v50 = vld [vmem:[#allocation11 + $0x1d4] sm:$0xf0]  ;;  %v4046_v52 = vld [vmem:[#allocation11 + $0x364] sm:$0xf] }
 0x122   :  { %2112 = vmatpush.bf16.msra.mxu0 %v3236_v61  ;;  %2126 = vmatpush.bf16.msra.mxu1 %v3364_v34  ;;  %v391_v61 = vperm.slane %v4432_v51, 0  ;;  %v3457_v34 = vld [vmem:[#allocation11 + $0x250] sm:$0xf0] }
 0x123   :  { %v3460_v36 = vor.u32 %v4010_v33, %v3457_v34  ;;  %v4001_v34 = vld [vmem:[#allocation11 + $0x1f4] sm:$0xf0] }
 0x125   :  { %2097 = vmatpush.bf16.msrb.mxu3 %v3632_v1  ;;  %v4002_v1 = vld [vmem:[#allocation11 + $0x204] sm:$0xf] }
 0x126   :  { %2113 = vmatpush.bf16.msra.mxu0 %v3220_v7  ;;  %2127 = vmatpush.bf16.msra.mxu1 %v3348_v45  ;;  %v3505_v7 = vld [vmem:[#allocation11 + $0x2b0] sm:$0xf0]  ;;  %v4040_v45 = vld [vmem:[#allocation11 + $0x32c] sm:$0xf0] }
 0x127   :  { %v3508_v8 = vor.u32 %v4022_v4, %v3505_v7  ;;  %v3665_v7 = vld [vmem:[#allocation11 + $0x3f0] sm:$0xf0] }
 0x128   :  { %v3668_v9 = vor.u32 %v4062_v3, %v3665_v7  ;;  %v3585_v3 = vld [vmem:[#allocation11 + $0x350] sm:$0xf0] }
 0x129   :  { %2139 = vmatpush.bf16.msra.mxu2 %v3508_v8  ;;  %2098 = vmatpush.bf16.msrb.mxu3 %v3616_v14 }
 0x12a   :  { %2114 = vmatpush.bf16.msra.mxu0 %v3204_v18  ;;  %2128 = vmatpush.bf16.msra.mxu1 %v3332_v58  ;;  %v3288_v58 = vor.u32 %v3969_v48, %v3287_v43  ;;  %v3399_v48 = vld [vmem:[#allocation11 + $0x1c8] sm:$0xf] }
 0x12d   :  { %2140 = vmatpush.bf16.msra.mxu2 %v3492_v21  ;;  %2099 = vmatpush.bf16.msrb.mxu3 %v3600_v26 }
 0x12e   :  { %2115 = vmatpush.bf16.msra.mxu0 %v3188_v25  ;;  %2129 = vmatpush.bf16.msra.mxu1 %v3316_v6  ;;  %v3428_v6 = vor.u32 %v4002_v1, %v3425_v2  ;;  %v3993_v1 = vld [vmem:[#allocation11 + $0x1b4] sm:$0xf0]  ;;  %v4042_v2 = vld [vmem:[#allocation11 + $0x344] sm:$0xf] }
 0x12f   :  { %v3588_v7 = vor.u32 %v4042_v2, %v3585_v3  ;;  %v3303_v3 = vld [vmem:[#allocation11 + $0x108] sm:$0xf] }
 0x131   :  { %v1048_v38 = vpop.f32.mrf.mxu0  ;;  %v1062_v49 = vpop.f32.mrf.mxu1  ;;  %2141 = vmatpush.bf16.msra.mxu2 %v3476_v5 }
 0x132   :  { %2116 = vmatpush.bf16.msra.mxu0 %v3172_v32  ;;  %v1049_v12 = vadd.f32 %v1048_v38, %v391_v61  ;;  %2130 = vmatpush.bf16.msra.mxu1 %v3300_v19  ;;  %v3584_v32 = vor.u32 %v4044_v11, %v3583_v30  ;;  %v392_v38 = vperm.slane %v4432_v51, 1  ;;  %v3223_v11 = vld [vmem:[#allocation11 + $0x68] sm:$0xf] }
 0x134   :  { %v1063_v23 = vadd.f32 %v1062_v49, %v1049_v12  ;;  %2100 = vmatpush.bf16.msrb.mxu3 %v3584_v32  ;;  %v3568_v49 = vor.u32 %v4040_v45, %v3567_v44  ;;  %v3255_v12 = vld [vmem:[#allocation11 + $0xa8] sm:$0xf] }
 0x135   :  { %2142 = vmatpush.bf16.msra.mxu2 %v3460_v36  ;;  %v3256_v21 = vor.u32 %v3961_v16, %v3255_v12  ;;  %v3415_v32 = vld [vmem:[#allocation11 + $0x1e8] sm:$0xf]  ;;  %v3617_v36 = vld [vmem:[#allocation11 + $0x390] sm:$0xf0]  ;;  %v3989_v16 = vld [vmem:[#allocation11 + $0x194] sm:$0xf0] }
 0x136   :  { %v3416_v44 = vor.u32 %v4001_v34, %v3415_v32  ;;  %v3207_v45 = vld [vmem:[#allocation11 + $0x48] sm:$0xf]  ;;  %v4033_v32 = vld [vmem:[#allocation11 + $0x2f4] sm:$0xf0]  ;;  %v3273_v34 = vld [vmem:[#allocation11 + $0xd8] sm:$0xf0] }
 0x137   :  { %v3175_v12 = vld [vmem:[#allocation11 + $0x8] sm:$0xf] }
 0x138   :  { %2101 = vmatpush.bf16.msrb.mxu3 %v3568_v49 }
 0x139   :  { %v1050_v0 = vpop.f32.mrf.mxu0  ;;  %v1064_v13 = vpop.f32.mrf.mxu1  ;;  %2143 = vmatpush.bf16.msra.mxu2 %v3444_v54 }
 0x13a   :  { %v1051_v24 = vadd.f32 %v1050_v0, %v391_v61  ;;  %v4036_v61 = vld [vmem:[#allocation11 + $0x30c] sm:$0xf0] }
 0x13b   :  { %v3552_v0 = vor.u32 %v4036_v61, %v3551_v60  ;;  %v3400_v60 = vor.u32 %v3997_v50, %v3399_v48  ;;  %v3191_v61 = vld [vmem:[#allocation11 + $0x28] sm:$0xf]  ;;  %v3959_v48 = vld [vmem:[#allocation11 + $0xac] sm:$0xf]  ;;  %v3257_v50 = vld [vmem:[#allocation11 + $0xb8] sm:$0xf0] }
 0x13c   :  { %v1065_v31 = vadd.f32 %v1064_v13, %v1051_v24  ;;  %v4054_v24 = vld [vmem:[#allocation11 + $0x3a4] sm:$0xf] }
 0x13d   :  { %2102 = vmatpush.bf16.msrb.mxu3 %v3552_v0  ;;  %2144 = vmatpush.bf16.msra.mxu2 %v3428_v6  ;;  %v3383_v0 = vld [vmem:[#allocation11 + $0x1a8] sm:$0xf] }
 0x13e   :  { %v1076_v18 = vpop.f32.mrf.mxu2  ;;  %v1090_v41 = vpop.f32.mrf.mxu3 }
 0x13f   :  { %v1077_v29 = vadd.f32 %v1076_v18, %v1063_v23  ;;  %v3649_v18 = vld [vmem:[#allocation11 + $0x3d0] sm:$0xf0]  ;;  %v3957_v23 = vld [vmem:[#allocation11 + $0x94] sm:$0xf0] }
 0x140   :  { %v3652_v19 = vor.u32 %v4058_v17, %v3649_v18  ;;  %v3240_v30 = vor.u32 %v3957_v23, %v3239_v46  ;;  %v4038_v17 = vld [vmem:[#allocation11 + $0x324] sm:$0xf]  ;;  %v3569_v18 = vld [vmem:[#allocation11 + $0x330] sm:$0xf0] }
 0x141   :  { %v1104_v25 = vpop.f32.mrf.mxu0  ;;  %v1091_v37 = vadd.f32 %v1090_v41, %v1077_v29  ;;  %2151 = vmatpush.bf16.msra.mxu3 %v3668_v9 }
 0x142   :  { %v1118_v39 = vpop.f32.mrf.mxu1  ;;  %v1105_v62 = vadd.f32 %v1104_v25, %v392_v38  ;;  %v3633_v25 = vld [vmem:[#allocation11 + $0x3b0] sm:$0xf0] }
 0x143   :  { %v1263_v55 = vmax.f32 %v1091_v37, 0.0  ;;  %v3636_v27 = vor.u32 %v4054_v24, %v3633_v25  ;;  %v393_v37 = vperm.slane %v4432_v51, 2 }
 0x144   :  { %v1119_v13 = vadd.f32 %v1118_v39, %v1105_v62  ;;  %v3945_v62 = vld [vmem:[#allocation11 + $0x34] sm:$0xf0] }
 0x145   :  { %2152 = vmatpush.bf16.msra.mxu3 %v3652_v19  ;;  %v3192_v9 = vor.u32 %v3945_v62, %v3191_v61  ;;  %v3241_v61 = vld [vmem:[#allocation11 + $0x98] sm:$0xf0]  ;;  %v394_v62 = vperm.slane %v4432_v51, 3 }
 0x146   :  { %v1078_v35 = vpop.f32.mrf.mxu2  ;;  %v1092_v42 = vpop.f32.mrf.mxu3 }
 0x147   :  { %v1079_v40 = vadd.f32 %v1078_v35, %v1065_v31  ;;  %v3953_v31 = vld [vmem:[#allocation11 + $0x74] sm:$0xf0]  ;;  %v4050_v35 = vld [vmem:[#allocation11 + $0x384] sm:$0xf] }
 0x148   :  { %v3224_v43 = vor.u32 %v3953_v31, %v3223_v11  ;;  %v3553_v11 = vld [vmem:[#allocation11 + $0x310] sm:$0xf0] }
 0x149   :  { %v1093_v47 = vadd.f32 %v1092_v42, %v1079_v40  ;;  %v1106_v53 = vpop.f32.mrf.mxu0  ;;  %2153 = vmatpush.bf16.msra.mxu3 %v3636_v27  ;;  %v3985_v27 = vld [vmem:[#allocation11 + $0x174] sm:$0xf0] }
 0x14a   :  { %v1107_v14 = vadd.f32 %v1106_v53, %v392_v38  ;;  %v1120_v15 = vpop.f32.mrf.mxu1  ;;  %v3620_v38 = vor.u32 %v4050_v35, %v3617_v36  ;;  %v3601_v53 = vld [vmem:[#allocation11 + $0x370] sm:$0xf0] }
 0x14b   :  { %v1267_v56 = vmax.f32 %v1093_v47, 0.0  ;;  %v3949_v47 = vld [vmem:[#allocation11 + $0x54] sm:$0xf0] }
 0x14c   :  { %v1121_v22 = vadd.f32 %v1120_v15, %v1107_v14  ;;  %v3208_v59 = vor.u32 %v3949_v47, %v3207_v45  ;;  %v3367_v14 = vld [vmem:[#allocation11 + $0x188] sm:$0xf]  ;;  %v4029_v47 = vld [vmem:[#allocation11 + $0x2d4] sm:$0xf0] }
 0x14d   :  { %v4436_v63 = vpack.c.bf16 %v1267_v56, %v1263_v55  ;;  %2154 = vmatpush.bf16.msra.mxu3 %v3620_v38  ;;  %v3604_v56 = vor.u32 %v4046_v52, %v3601_v53  ;;  %v3368_v25 = vor.u32 %v3989_v16, %v3367_v14  ;;  %v3479_v16 = vld [vmem:[#allocation11 + $0x268] sm:$0xf] }
 0x14e   :  { %v1132_v4 = vpop.f32.mrf.mxu2  ;;  %v1146_v8 = vpop.f32.mrf.mxu3 }
 0x14f   :  { %2061 = vmatmul.bf16.vlgmr.msrb.gmra.mxu0 %v4436_v63  ;;  %v1133_v20 = vadd.f32 %v1132_v4, %v1119_v13  ;;  %v3941_v13 = vld [vmem:[#allocation11 + $0x14] sm:$0xf0] }
 0x150   :  { %2165 = vmatpush.bf16.msrb.mxu0 %v3288_v58 }
 0x151   :  { %v1147_v28 = vadd.f32 %v1146_v8, %v1133_v20  ;;  %2155 = vmatpush.bf16.msra.mxu3 %v3604_v56  ;;  %v3967_v20 = vld [vmem:[#allocation11 + $0xec] sm:$0xf]  ;;  %v3319_v56 = vld [vmem:[#allocation11 + $0x128] sm:$0xf] }
 0x152   :  { %v1160_v41 = vpop.f32.mrf.mxu0 }
 0x153   :  { %v1264_v39 = vmax.f32 %v1147_v28, 0.0  ;;  %v1161_v54 = vadd.f32 %v1160_v41, %v393_v37  ;;  %v3289_v41 = vld [vmem:[#allocation11 + $0xf8] sm:$0xf0] }
 0x154   :  { %2166 = vmatpush.bf16.msrb.mxu0 %v3272_v10  ;;  %v1174_v40 = vpop.f32.mrf.mxu1  ;;  %v3384_v10 = vor.u32 %v3993_v1, %v3383_v0 }
 0x155   :  { %v1175_v4 = vadd.f32 %v1174_v40, %v1161_v54  ;;  %2156 = vmatpush.bf16.msra.mxu3 %v3588_v7  ;;  %v4021_v7 = vld [vmem:[#allocation11 + $0x294] sm:$0xf0] }
 0x156   :  { %v1134_v26 = vpop.f32.mrf.mxu2  ;;  %v1148_v29 = vpop.f32.mrf.mxu3 }
 0x157   :  { %v1135_v5 = vadd.f32 %v1134_v26, %v1121_v22  ;;  %v3176_v22 = vor.u32 %v3941_v13, %v3175_v12  ;;  %v3351_v26 = vld [vmem:[#allocation11 + $0x168] sm:$0xf]  ;;  %v3999_v12 = vld [vmem:[#allocation11 + $0x1ec] sm:$0xf]  ;;  %v3417_v13 = vld [vmem:[#allocation11 + $0x1f8] sm:$0xf0] }
 0x158   :  { %2167 = vmatpush.bf16.msrb.mxu0 %v3256_v21  ;;  %v3572_v21 = vor.u32 %v4038_v17, %v3569_v18  ;;  %v3352_v38 = vor.u32 %v3985_v27, %v3351_v26  ;;  %v3420_v18 = vor.u32 %v3999_v12, %v3417_v13  ;;  %v3463_v27 = vld [vmem:[#allocation11 + $0x248] sm:$0xf] }
 0x159   :  { %v1149_v33 = vadd.f32 %v1148_v29, %v1135_v5  ;;  %v3292_v5 = vor.u32 %v3967_v20, %v3289_v41  ;;  %v3543_v29 = vld [vmem:[#allocation11 + $0x2e8] sm:$0xf]  ;;  %v3947_v20 = vld [vmem:[#allocation11 + $0x4c] sm:$0xf]  ;;  %v3209_v41 = vld [vmem:[#allocation11 + $0x58] sm:$0xf0] }
 0x15a   :  { %v1162_v55 = vpop.f32.mrf.mxu0  ;;  %2157 = vmatpush.bf16.msra.mxu3 %v3572_v21  ;;  %v3212_v26 = vor.u32 %v3947_v20, %v3209_v41  ;;  %v3655_v13 = vld [vmem:[#allocation11 + $0x3c8] sm:$0xf] }
 0x15b   :  { %v1268_v42 = vmax.f32 %v1149_v33, 0.0  ;;  %v1163_v6 = vadd.f32 %v1162_v55, %v393_v37  ;;  %v3963_v33 = vld [vmem:[#allocation11 + $0xcc] sm:$0xf]  ;;  %v3260_v55 = vor.u32 %v3959_v48, %v3257_v50  ;;  %v3369_v50 = vld [vmem:[#allocation11 + $0x198] sm:$0xf0] }
 0x15c   :  { %2168 = vmatpush.bf16.msrb.mxu0 %v3240_v30  ;;  %v1176_v15 = vpop.f32.mrf.mxu1  ;;  %v4034_v30 = vld [vmem:[#allocation11 + $0x304] sm:$0xf]  ;;  %v3276_v40 = vor.u32 %v3963_v33, %v3273_v34  ;;  %v3385_v33 = vld [vmem:[#allocation11 + $0x1b8] sm:$0xf0]  ;;  %v3987_v48 = vld [vmem:[#allocation11 + $0x18c] sm:$0xf] }
 0x15d   :  { %v4440_v49 = vpack.c.bf16 %v1268_v42, %v1264_v39  ;;  %v1177_v19 = vadd.f32 %v1176_v15, %v1163_v6  ;;  %v3556_v35 = vor.u32 %v4034_v30, %v3553_v11  ;;  %v3544_v39 = vor.u32 %v4033_v32, %v3543_v29  ;;  %v3335_v42 = vld [vmem:[#allocation11 + $0x148] sm:$0xf]  ;;  %v4013_v30 = vld [vmem:[#allocation11 + $0x254] sm:$0xf0]  ;;  %v3943_v11 = vld [vmem:[#allocation11 + $0x2c] sm:$0xf] }
 0x15e   :  { %v1188_v57 = vpop.f32.mrf.mxu2  ;;  %v3495_v6 = vld [vmem:[#allocation11 + $0x288] sm:$0xf]  ;;  %v3991_v32 = vld [vmem:[#allocation11 + $0x1ac] sm:$0xf] }
 0x15f   :  { %v1202_v58 = vpop.f32.mrf.mxu3  ;;  %2075 = vmatmul.bf16.vlgmr.msrb.gmra.mxu1 %v4440_v49  ;;  %2117 = vmatmul.bf16.vlgmr.msra.gmra.mxu0 %v4436_v63  ;;  %v1189_v8 = vadd.f32 %v1188_v57, %v1175_v4  ;;  %v3977_v57 = vld [vmem:[#allocation11 + $0x134] sm:$0xf0]  ;;  %v3496_v51 = vor.u32 %v4021_v7, %v3495_v6  ;;  %v3639_v41 = vld [vmem:[#allocation11 + $0x3a8] sm:$0xf] }
 0x160   :  { %2169 = vmatpush.bf16.msrb.mxu0 %v3224_v43  ;;  %2179 = vmatpush.bf16.msrb.mxu1 %v3416_v44  ;;  %v3981_v43 = vld [vmem:[#allocation11 + $0x154] sm:$0xf0]  ;;  %v3527_v44 = vld [vmem:[#allocation11 + $0x2c8] sm:$0xf]  ;;  %v3320_v0 = vor.u32 %v3977_v57, %v3319_v56 }
 0x161   :  { %v1203_v23 = vadd.f32 %v1202_v58, %v1189_v8  ;;  %2158 = vmatpush.bf16.msra.mxu3 %v3556_v35  ;;  %v3336_v52 = vor.u32 %v3981_v43, %v3335_v42  ;;  %v3528_v54 = vor.u32 %v4029_v47, %v3527_v44  ;;  %v3511_v58 = vld [vmem:[#allocation11 + $0x2a8] sm:$0xf]  ;;  %v3973_v4 = vld [vmem:[#allocation11 + $0x114] sm:$0xf0]  ;;  %v3951_v8 = vld [vmem:[#allocation11 + $0x6c] sm:$0xf] }
 0x162   :  { %v3304_v14 = vor.u32 %v3973_v4, %v3303_v3  ;;  %v4009_v42 = vld [vmem:[#allocation11 + $0x234] sm:$0xf0]  ;;  %v3939_v43 = vld [vmem:[#allocation11 + $0xc] sm:$0xf]  ;;  %v3177_v44 = vld [vmem:[#allocation11 + $0x18] sm:$0xf0] }
 0x163   :  { %v1265_v36 = vmax.f32 %v1203_v23, 0.0  ;;  %v3401_v23 = vld [vmem:[#allocation11 + $0x1d8] sm:$0xf0]  ;;  %v3180_v56 = vor.u32 %v3939_v43, %v3177_v44  ;;  %v3431_v57 = vld [vmem:[#allocation11 + $0x208] sm:$0xf] }
 0x164   :  { %2170 = vmatpush.bf16.msrb.mxu0 %v3208_v59  ;;  %2180 = vmatpush.bf16.msrb.mxu1 %v3400_v60  ;;  %v4025_v59 = vld [vmem:[#allocation11 + $0x2b4] sm:$0xf0]  ;;  %v3955_v60 = vld [vmem:[#allocation11 + $0x8c] sm:$0xf]  ;;  %v3545_v3 = vld [vmem:[#allocation11 + $0x2f8] sm:$0xf0] }
 0x165   :  { %v3512_v1 = vor.u32 %v4025_v59, %v3511_v58  ;;  %v3244_v2 = vor.u32 %v3955_v60, %v3241_v61  ;;  %v4005_v58 = vld [vmem:[#allocation11 + $0x214] sm:$0xf0]  ;;  %v3372_v60 = vor.u32 %v3987_v48, %v3369_v50  ;;  %v3671_v61 = vld [vmem:[#allocation11 + $0x3e8] sm:$0xf]  ;;  %v4011_v43 = vld [vmem:[#allocation11 + $0x24c] sm:$0xf] }
 0x166   :  { %v1190_v46 = vpop.f32.mrf.mxu2  ;;  %v3432_v7 = vor.u32 %v4005_v58, %v3431_v57  ;;  %v3465_v44 = vld [vmem:[#allocation11 + $0x258] sm:$0xf0]  ;;  %v3575_v50 = vld [vmem:[#allocation11 + $0x328] sm:$0xf]  ;;  %v4037_v58 = vld [vmem:[#allocation11 + $0x314] sm:$0xf0] }
 0x167   :  { %v1191_v24 = vadd.f32 %v1190_v46, %v1177_v19  ;;  %v1204_v28 = vpop.f32.mrf.mxu3  ;;  %v4017_v19 = vld [vmem:[#allocation11 + $0x274] sm:$0xf0]  ;;  %v3468_v48 = vor.u32 %v4011_v43, %v3465_v44  ;;  %v3559_v57 = vld [vmem:[#allocation11 + $0x308] sm:$0xf]  ;;  %v4074_v43 = vld [vmem:[#allocation13 + $0x40] sm:$0xff] }
 0x168   :  { %2171 = vmatpush.bf16.msrb.mxu0 %v3192_v9  ;;  %2181 = vmatpush.bf16.msrb.mxu1 %v3384_v10  ;;  %v3225_v9 = vld [vmem:[#allocation11 + $0x78] sm:$0xf0]  ;;  %v4086_v44 = vld [vmem:[#allocation13 + $0xa0] sm:$0xff] }
 0x169   :  { %v1205_v31 = vadd.f32 %v1204_v28, %v1191_v24  ;;  %v3228_v15 = vor.u32 %v3951_v8, %v3225_v9 }
 0x16b   :  { %v1269_v37 = vmax.f32 %v1205_v31, 0.0  ;;  %v3193_v31 = vld [vmem:[#allocation11 + $0x38] sm:$0xf0] }
 0x16c   :  { %2172 = vmatpush.bf16.msrb.mxu0 %v3176_v22  ;;  %2182 = vmatpush.bf16.msrb.mxu1 %v3368_v25  ;;  %v3995_v22 = vld [vmem:[#allocation11 + $0x1cc] sm:$0xf]  ;;  %v3480_v25 = vor.u32 %v4017_v19, %v3479_v16 }
 0x16d   :  { %v4444_v45 = vpack.c.bf16 %v1269_v37, %v1265_v36  ;;  %v3404_v29 = vor.u32 %v3995_v22, %v3401_v23  ;;  %v3464_v36 = vor.u32 %v4013_v30, %v3463_v27  ;;  %v3196_v37 = vor.u32 %v3943_v11, %v3193_v31  ;;  %v4027_v16 = vld [vmem:[#allocation11 + $0x2cc] sm:$0xf]  ;;  %v3321_v22 = vld [vmem:[#allocation11 + $0x138] sm:$0xf0]  ;;  %v3623_v27 = vld [vmem:[#allocation11 + $0x388] sm:$0xf] }
 0x16e   :  { %v4023_v23 = vld [vmem:[#allocation11 + $0x2ac] sm:$0xf]  ;;  %v3497_v11 = vld [vmem:[#allocation11 + $0x298] sm:$0xf0] }
 0x16f   :  { %2131 = vmatmul.bf16.vlgmr.msra.gmra.mxu1 %v4440_v49  ;;  %2173 = vmatmul.bf16.vlgmr.msrb.gmra.mxu0 %v4436_v63  ;;  %v4019_v30 = vld [vmem:[#allocation11 + $0x28c] sm:$0xf] }
 0x170   :  { %2221 = vmatpush.bf16.msra.mxu0 %v3292_v5  ;;  %2089 = vmatmul.bf16.vlgmr.msrb.gmra.mxu2 %v4444_v45 }
 0x171   :  { %2183 = vmatpush.bf16.msrb.mxu1 %v3352_v38  ;;  %2193 = vmatpush.bf16.msrb.mxu2 %v3544_v39  ;;  %v3447_v38 = vld [vmem:[#allocation11 + $0x228] sm:$0xf] }
 0x172   :  { %v1216_v53 = vpop.f32.mrf.mxu0 }
 0x173   :  { %v1217_v17 = vadd.f32 %v1216_v53, %v394_v62 }
 0x174   :  { %2222 = vmatpush.bf16.msra.mxu0 %v3276_v40  ;;  %v1230_v10 = vpop.f32.mrf.mxu1  ;;  %v3388_v40 = vor.u32 %v3991_v32, %v3385_v33  ;;  %v3500_v33 = vor.u32 %v4019_v30, %v3497_v11  ;;  %v4078_v30 = vld [vmem:[#allocation13 + $0x60] sm:$0xff] }
 0x175   :  { %2184 = vmatpush.bf16.msrb.mxu1 %v3336_v52  ;;  %2194 = vmatpush.bf16.msrb.mxu2 %v3528_v54  ;;  %v1231_v28 = vadd.f32 %v1230_v10, %v1217_v17  ;;  %v3529_v17 = vld [vmem:[#allocation11 + $0x2d8] sm:$0xf0] }
 0x176   :  { %v3532_v20 = vor.u32 %v4027_v16, %v3529_v17  ;;  %v4043_v16 = vld [vmem:[#allocation11 + $0x34c] sm:$0xf]  ;;  %v3593_v17 = vld [vmem:[#allocation11 + $0x358] sm:$0xf0] }
 0x178   :  { %2223 = vmatpush.bf16.msra.mxu0 %v3260_v55  ;;  %v3448_v55 = vor.u32 %v4009_v42, %v3447_v38  ;;  %v4045_v42 = vld [vmem:[#allocation11 + $0x354] sm:$0xf0] }
 0x179   :  { %2185 = vmatpush.bf16.msrb.mxu1 %v3320_v0  ;;  %2195 = vmatpush.bf16.msrb.mxu2 %v3512_v1  ;;  %v3983_v0 = vld [vmem:[#allocation11 + $0x16c] sm:$0xf]  ;;  %v3353_v1 = vld [vmem:[#allocation11 + $0x178] sm:$0xf0] }
 0x17a   :  { %v1218_v21 = vpop.f32.mrf.mxu0  ;;  %v3356_v10 = vor.u32 %v3983_v0, %v3353_v1  ;;  %v3560_v0 = vor.u32 %v4037_v58, %v3559_v57  ;;  %v4084_v57 = vld [vmem:[#allocation13 + $0x90] sm:$0xff] }
 0x17b   :  { %v1219_v5 = vadd.f32 %v1218_v21, %v394_v62  ;;  %v4065_v62 = vld [vmem:[#allocation11 + $0x3f4] sm:$0xf0] }
 0x17c   :  { %2224 = vmatpush.bf16.msra.mxu0 %v3244_v2  ;;  %v1232_v35 = vpop.f32.mrf.mxu1  ;;  %v4031_v2 = vld [vmem:[#allocation11 + $0x2ec] sm:$0xf]  ;;  %v3672_v8 = vor.u32 %v4065_v62, %v3671_v61  ;;  %v4057_v21 = vld [vmem:[#allocation11 + $0x3b4] sm:$0xf0]  ;;  %v3673_v62 = vld [vmem:[#allocation11 + $0x3f8] sm:$0xf0] }
 0x17d   :  { %2186 = vmatpush.bf16.msrb.mxu1 %v3304_v14  ;;  %2196 = vmatpush.bf16.msrb.mxu2 %v3496_v51  ;;  %v1233_v39 = vadd.f32 %v1232_v35, %v1219_v5  ;;  %v3548_v12 = vor.u32 %v4031_v2, %v3545_v3  ;;  %v4061_v14 = vld [vmem:[#allocation11 + $0x3d4] sm:$0xf0]  ;;  %v3979_v51 = vld [vmem:[#allocation11 + $0x14c] sm:$0xf]  ;;  %v3657_v3 = vld [vmem:[#allocation11 + $0x3d8] sm:$0xf0] }
 0x17e   :  { %v1244_v46 = vpop.f32.mrf.mxu2  ;;  %v3971_v5 = vld [vmem:[#allocation11 + $0x10c] sm:$0xf]  ;;  %v4049_v35 = vld [vmem:[#allocation11 + $0x374] sm:$0xf0] }
 0x17f   :  { %v1258_v24 = vpop.f32.mrf.mxu3  ;;  %v1245_v34 = vadd.f32 %v1244_v46, %v1231_v28  ;;  %v3975_v46 = vld [vmem:[#allocation11 + $0x12c] sm:$0xf]  ;;  %v4053_v28 = vld [vmem:[#allocation11 + $0x394] sm:$0xf0] }
 0x180   :  { %2225 = vmatpush.bf16.msra.mxu0 %v3228_v15  ;;  %2187 = vmatmul.bf16.vlgmr.msrb.gmra.mxu1 %v4440_v49  ;;  %v3337_v15 = vld [vmem:[#allocation11 + $0x158] sm:$0xf0]  ;;  %v3624_v31 = vor.u32 %v4053_v28, %v3623_v27  ;;  %v4063_v61 = vld [vmem:[#allocation11 + $0x3ec] sm:$0xf]  ;;  %v4068_v27 = vld [vmem:[#allocation13 + $0x10] sm:$0xff] }
 0x181   :  { %2235 = vmatpush.bf16.msra.mxu1 %v3420_v18  ;;  %2145 = vmatmul.bf16.vlgmr.msra.gmra.mxu2 %v4444_v45  ;;  %v1259_v52 = vadd.f32 %v1258_v24, %v1245_v34  ;;  %v3656_v18 = vor.u32 %v4061_v14, %v3655_v13  ;;  %v3340_v19 = vor.u32 %v3979_v51, %v3337_v15  ;;  %v3513_v24 = vld [vmem:[#allocation11 + $0x2b8] sm:$0xf0]  ;;  %v3607_v34 = vld [vmem:[#allocation11 + $0x368] sm:$0xf]  ;;  %v4059_v2 = vld [vmem:[#allocation11 + $0x3cc] sm:$0xf] }
 0x182   :  { %2197 = vmatpush.bf16.msrb.mxu2 %v3480_v25  ;;  %v3640_v25 = vor.u32 %v4057_v21, %v3639_v41  ;;  %v3608_v38 = vor.u32 %v4049_v35, %v3607_v34  ;;  %v3676_v1 = vor.u32 %v4063_v61, %v3673_v62  ;;  %v4047_v14 = vld [vmem:[#allocation11 + $0x36c] sm:$0xf]  ;;  %v3609_v51 = vld [vmem:[#allocation11 + $0x378] sm:$0xf0]  ;;  %v4080_v28 = vld [vmem:[#allocation13 + $0x70] sm:$0xff] }
 0x183   :  { %v1266_v4 = vmax.f32 %v1259_v52, 0.0  ;;  %v4041_v52 = vld [vmem:[#allocation11 + $0x334] sm:$0xf0]  ;;  %v3612_v15 = vor.u32 %v4047_v14, %v3609_v51  ;;  %v4035_v21 = vld [vmem:[#allocation11 + $0x30c] sm:$0xf]  ;;  %v4076_v35 = vld [vmem:[#allocation13 + $0x50] sm:$0xff] }
 0x184   :  { %2226 = vmatpush.bf16.msra.mxu0 %v3212_v26  ;;  %v3516_v26 = vor.u32 %v4023_v23, %v3513_v24  ;;  %v4072_v23 = vld [vmem:[#allocation13 + $0x30] sm:$0xff]  ;;  %v4071_v24 = vld [vmem:[#allocation13 + $0x28] sm:$0xff] }
 0x185   :  { %2236 = vmatpush.bf16.msra.mxu1 %v3404_v29  ;;  %v3305_v29 = vld [vmem:[#allocation11 + $0x118] sm:$0xf0]  ;;  %v4096_v14 = vld [vmem:[#allocation13 + $0xf0] sm:$0xff] }
 0x186   :  { %v1246_v47 = vpop.f32.mrf.mxu2  ;;  %2198 = vmatpush.bf16.msrb.mxu2 %v3464_v36  ;;  %v3308_v32 = vor.u32 %v3971_v5, %v3305_v29  ;;  %v4015_v36 = vld [vmem:[#allocation11 + $0x26c] sm:$0xf] }
 0x187   :  { %v1247_v53 = vadd.f32 %v1246_v47, %v1233_v39  ;;  %v1260_v54 = vpop.f32.mrf.mxu3  ;;  %v4067_v5 = vld [vmem:[#allocation13 + $0x8] sm:$0xff] }
 0x188   :  { %2227 = vmatpush.bf16.msra.mxu0 %v3196_v37  ;;  %v3481_v37 = vld [vmem:[#allocation11 + $0x278] sm:$0xf0]  ;;  %v4079_v29 = vld [vmem:[#allocation13 + $0x68] sm:$0xff] }
 0x189   :  { %v1261_v59 = vadd.f32 %v1260_v54, %v1247_v53  ;;  %2237 = vmatpush.bf16.msra.mxu1 %v3388_v40  ;;  %v3484_v39 = vor.u32 %v4015_v36, %v3481_v37  ;;  %v3591_v40 = vld [vmem:[#allocation11 + $0x348] sm:$0xf]  ;;  %v4007_v53 = vld [vmem:[#allocation11 + $0x22c] sm:$0xf]  ;;  %v3449_v54 = vld [vmem:[#allocation11 + $0x238] sm:$0xf0] }
 0x18a   :  { %2199 = vmatpush.bf16.msrb.mxu2 %v3448_v55  ;;  %v3592_v47 = vor.u32 %v4045_v42, %v3591_v40  ;;  %v3576_v55 = vor.u32 %v4041_v52, %v3575_v50  ;;  %v4088_v36 = vld [vmem:[#allocation13 + $0xb0] sm:$0xff]  ;;  %v4075_v37 = vld [vmem:[#allocation13 + $0x48] sm:$0xff]  ;;  %v4085_v50 = vld [vmem:[#allocation13 + $0x98] sm:$0xff] }
 0x18b   :  { %v1270_v6 = vmax.f32 %v1261_v59, 0.0  ;;  %v4003_v59 = vld [vmem:[#allocation11 + $0x20c] sm:$0xf]  ;;  %v4465_v40 = vld [vmem:[%s4483_s6] sm:$0xf] }
 0x18c   :  { %2228 = vmatpush.bf16.msra.mxu0 %v3180_v56  ;;  %v3452_v56 = vor.u32 %v4007_v53, %v3449_v54 }
 0x18d   :  { %v4452_v9 = vpack.c.bf16 %v1270_v6, %v1266_v4  ;;  %2238 = vmatpush.bf16.msra.mxu1 %v3372_v60  ;;  %v3433_v60 = vld [vmem:[#allocation11 + $0x218] sm:$0xf0]  ;;  %v3660_v4 = vor.u32 %v4059_v2, %v3657_v3  ;;  %v4055_v6 = vld [vmem:[#allocation11 + $0x3ac] sm:$0xf] }
 0x18e   :  { %2200 = vmatpush.bf16.msrb.mxu2 %v3432_v7  ;;  %v3641_v7 = vld [vmem:[#allocation11 + $0x3b8] sm:$0xf0] }
 0x18f   :  { %2103 = vmatmul.bf16.vlgmr.msrb.gmra.mxu3 %v4452_v9  ;;  %2229 = vmatmul.bf16.vlgmr.msra.gmra.mxu0 %v4436_v63  ;;  %v3324_v63 = vor.u32 %v3975_v46, %v3321_v22  ;;  %v4073_v22 = vld [vmem:[#allocation13 + $0x38] sm:$0xff] }
 0x190   :  { %2207 = vmatpush.bf16.msrb.mxu3 %v3672_v8  ;;  %v3644_v8 = vor.u32 %v4055_v6, %v3641_v7  ;;  %2549 = vmatpush.bf16.msrb.mxu0 %v4073_v22  ;;  %v4082_v6 = vld [vmem:[#allocation13 + $0x80] sm:$0xff]  ;;  %v4097_v7 = vld [vmem:[#allocation13 + $0xf8] sm:$0xff] }
 0x191   :  { %2239 = vmatpush.bf16.msra.mxu1 %v3356_v10  ;;  %2201 = vmatmul.bf16.vlgmr.msrb.gmra.mxu2 %v4444_v45  ;;  %v4051_v10 = vld [vmem:[#allocation11 + $0x38c] sm:$0xf] }
 0x192   :  { %2249 = vmatpush.bf16.msra.mxu2 %v3548_v12  ;;  %v3625_v12 = vld [vmem:[#allocation11 + $0x398] sm:$0xf0] }
 0x193   :  { %v3628_v13 = vor.u32 %v4051_v10, %v3625_v12  ;;  %v1406_v10 = vperm.slane %v4465_v40, 1 }
 0x194   :  { %2208 = vmatpush.bf16.msrb.mxu3 %v3656_v18  ;;  %v3596_v18 = vor.u32 %v4043_v16, %v3593_v17  ;;  %2550 = vmatpush.bf16.msrb.mxu0 %v4072_v23  ;;  %v4095_v17 = vld [vmem:[#allocation13 + $0xe8] sm:$0xff] }
 0x195   :  { %2240 = vmatpush.bf16.msra.mxu1 %v3340_v19  ;;  %v4039_v19 = vld [vmem:[#allocation11 + $0x32c] sm:$0xf] }
 0x196   :  { %2250 = vmatpush.bf16.msra.mxu2 %v3532_v20  ;;  %v3577_v20 = vld [vmem:[#allocation11 + $0x338] sm:$0xf0] }
 0x197   :  { %v3580_v41 = vor.u32 %v4039_v19, %v3577_v20 }
 0x198   :  { %2209 = vmatpush.bf16.msrb.mxu3 %v3640_v25  ;;  %2551 = vmatpush.bf16.msrb.mxu0 %v4071_v24  ;;  %v4070_v25 = vld [vmem:[#allocation13 + $0x20] sm:$0xff] }
 0x199   :  { %2241 = vmatpush.bf16.msra.mxu1 %v3324_v63  ;;  %v4069_v63 = vld [vmem:[#allocation13 + $0x18] sm:$0xff] }
 0x19a   :  { %2251 = vmatpush.bf16.msra.mxu2 %v3516_v26  ;;  %v4081_v26 = vld [vmem:[#allocation13 + $0x78] sm:$0xff] }
 0x19c   :  { %2210 = vmatpush.bf16.msrb.mxu3 %v3624_v31  ;;  %2552 = vmatpush.bf16.msrb.mxu0 %v4070_v25  ;;  %v4077_v31 = vld [vmem:[#allocation13 + $0x58] sm:$0xff] }
 0x19d   :  { %2242 = vmatpush.bf16.msra.mxu1 %v3308_v32  ;;  %v4089_v32 = vld [vmem:[#allocation13 + $0xb8] sm:$0xff] }
 0x19e   :  { %2252 = vmatpush.bf16.msra.mxu2 %v3500_v33 }
 0x19f   :  { %2159 = vmatmul.bf16.vlgmr.msra.gmra.mxu3 %v4452_v9 }
 0x1a0   :  { %2211 = vmatpush.bf16.msrb.mxu3 %v3608_v38  ;;  %2243 = vmatmul.bf16.vlgmr.msra.gmra.mxu1 %v4440_v49  ;;  %v3436_v49 = vor.u32 %v4003_v59, %v3433_v60  ;;  %v4087_v38 = vld [vmem:[#allocation13 + $0xa8] sm:$0xff] }
 0x1a1   :  { %2553 = vmatpush.bf16.msrb.mxu0 %v4069_v63  ;;  %2563 = vmatpush.bf16.msrb.mxu1 %v4081_v26 }
 0x1a2   :  { %2253 = vmatpush.bf16.msra.mxu2 %v3484_v39 }
 0x1a4   :  { %2212 = vmatpush.bf16.msrb.mxu3 %v3592_v47 }
 0x1a5   :  { %2554 = vmatpush.bf16.msrb.mxu0 %v4068_v27  ;;  %2564 = vmatpush.bf16.msrb.mxu1 %v4080_v28  ;;  %v4093_v28 = vld [vmem:[#allocation13 + $0xd8] sm:$0xff] }
 0x1a6   :  { %2254 = vmatpush.bf16.msra.mxu2 %v3468_v48  ;;  %v1405_v48 = vperm.slane %v4465_v40, 0 }
 0x1a8   :  { %2213 = vmatpush.bf16.msrb.mxu3 %v3576_v55 }
 0x1a9   :  { %2555 = vmatpush.bf16.msrb.mxu0 %v4067_v5  ;;  %2565 = vmatpush.bf16.msrb.mxu1 %v4079_v29  ;;  %v1407_v5 = vperm.slane %v4465_v40, 2 }
 0x1aa   :  { %2255 = vmatpush.bf16.msra.mxu2 %v3452_v56 }
 0x1ac   :  { %2214 = vmatpush.bf16.msrb.mxu3 %v3560_v0 }
 0x1ad   :  { %2566 = vmatpush.bf16.msrb.mxu1 %v4078_v30 }
 0x1ae   :  { %2256 = vmatpush.bf16.msra.mxu2 %v3436_v49  ;;  %v4083_v49 = vld [vmem:[#allocation13 + $0x88] sm:$0xff] }
 0x1af   :  { %2215 = vmatmul.bf16.vlgmr.msrb.gmra.mxu3 %v4452_v9 }
 0x1b0   :  { %2263 = vmatpush.bf16.msra.mxu3 %v3676_v1 }
 0x1b1   :  { %2257 = vmatmul.bf16.vlgmr.msra.gmra.mxu2 %v4444_v45  ;;  %v3561_v45 = vld [vmem:[#allocation11 + $0x318] sm:$0xf0]  ;;  %2567 = vmatpush.bf16.msrb.mxu1 %v4077_v31 }
 0x1b2   :  { %v3564_v46 = vor.u32 %v4035_v21, %v3561_v45  ;;  %2577 = vmatpush.bf16.msrb.mxu2 %v4089_v32  ;;  %v4094_v21 = vld [vmem:[#allocation13 + $0xe0] sm:$0xff] }
 0x1b4   :  { %2264 = vmatpush.bf16.msra.mxu3 %v3660_v4 }
 0x1b5   :  { %2568 = vmatpush.bf16.msrb.mxu1 %v4076_v35  ;;  %v4091_v35 = vld [vmem:[#allocation13 + $0xc8] sm:$0xff] }
 0x1b6   :  { %2578 = vmatpush.bf16.msrb.mxu2 %v4088_v36 }
 0x1b8   :  { %2265 = vmatpush.bf16.msra.mxu3 %v3644_v8 }
 0x1b9   :  { %2569 = vmatpush.bf16.msrb.mxu1 %v4075_v37 }
 0x1ba   :  { %2579 = vmatpush.bf16.msrb.mxu2 %v4087_v38 }
 0x1bc   :  { %2266 = vmatpush.bf16.msra.mxu3 %v3628_v13 }
 0x1bd   :  { %2570 = vmatpush.bf16.msrb.mxu1 %v4074_v43  ;;  %v4090_v43 = vld [vmem:[#allocation13 + $0xc0] sm:$0xff] }
 0x1be   :  { %2580 = vmatpush.bf16.msrb.mxu2 %v4086_v44 }
 0x1c0   :  { %2267 = vmatpush.bf16.msra.mxu3 %v3612_v15 }
 0x1c2   :  { %2581 = vmatpush.bf16.msrb.mxu2 %v4085_v50 }
 0x1c4   :  { %2268 = vmatpush.bf16.msra.mxu3 %v3596_v18 }
 0x1c6   :  { %2582 = vmatpush.bf16.msrb.mxu2 %v4084_v57 }
 0x1c8   :  { %2269 = vmatpush.bf16.msra.mxu3 %v3580_v41 }
 0x1ca   :  { %2583 = vmatpush.bf16.msrb.mxu2 %v4083_v49 }
 0x1cc   :  { %2270 = vmatpush.bf16.msra.mxu3 %v3564_v46  ;;  %v2062_v11 = vpop.f32.mrf.mxu0 }
 0x1cd   :  { %v2063_v53 = vadd.f32 %v2062_v11, %v1405_v48 }
 0x1ce   :  { %2584 = vmatpush.bf16.msrb.mxu2 %v4082_v6 }
 0x1cf   :  { %2271 = vmatmul.bf16.vlgmr.msra.gmra.mxu3 %v4452_v9  ;;  %v4066_v9 = vld [vmem:[#allocation13] sm:$0xff] }
 0x1d0   :  { %2556 = vmatpush.bf16.msrb.mxu0 %v4066_v9  ;;  %2591 = vmatpush.bf16.msrb.mxu3 %v4097_v7  ;;  %v4092_v9 = vld [vmem:[#allocation13 + $0xd0] sm:$0xff] }
 0x1d4   :  { %v2064_v39 = vpop.f32.mrf.mxu0  ;;  %2592 = vmatpush.bf16.msrb.mxu3 %v4096_v14 }
 0x1d5   :  { %v2065_v55 = vadd.f32 %v2064_v39, %v1405_v48 }
 0x1d8   :  { %2593 = vmatpush.bf16.msrb.mxu3 %v4095_v17 }
 0x1dc   :  { %v2076_v33 = vpop.f32.mrf.mxu1  ;;  %v2118_v54 = vpop.f32.mrf.mxu0  ;;  %2594 = vmatpush.bf16.msrb.mxu3 %v4094_v21 }
 0x1dd   :  { %v2077_v56 = vadd.f32 %v2076_v33, %v2063_v53  ;;  %v2119_v16 = vadd.f32 %v2118_v54, %v1406_v10 }
 0x1e0   :  { %2595 = vmatpush.bf16.msrb.mxu3 %v4093_v28 }
 0x1e4   :  { %v2078_v42 = vpop.f32.mrf.mxu1  ;;  %v2120_v8 = vpop.f32.mrf.mxu0  ;;  %2596 = vmatpush.bf16.msrb.mxu3 %v4092_v9 }
 0x1e5   :  { %v2079_v59 = vadd.f32 %v2078_v42, %v2065_v55  ;;  %v2121_v18 = vadd.f32 %v2120_v8, %v1406_v10 }
 0x1e8   :  { %2597 = vmatpush.bf16.msrb.mxu3 %v4091_v35 }
 0x1ec   :  { %v2132_v58 = vpop.f32.mrf.mxu1  ;;  %v2174_v45 = vpop.f32.mrf.mxu0  ;;  %2598 = vmatpush.bf16.msrb.mxu3 %v4090_v43 }
 0x1ed   :  { %v2133_v19 = vadd.f32 %v2132_v58, %v2119_v16  ;;  %v2175_v31 = vadd.f32 %v2174_v45, %v1407_v5 }
 0x1f3   :  { %v2090_v34 = vpop.f32.mrf.mxu2 }
 0x1f4   :  { %v2091_v60 = vadd.f32 %v2090_v34, %v2077_v56  ;;  %v2134_v13 = vpop.f32.mrf.mxu1  ;;  %v2176_v30 = vpop.f32.mrf.mxu0  ;;  %v1408_v56 = vperm.slane %v4465_v40, 3  ;;  %v4112_v40 = vld [vmem:[%s4485_s8] ss:$0 sm:$0xff]  ;;  %s4327_s8 = smov 128  }
 0x1f5   :  { %v2135_v20 = vadd.f32 %v2134_v13, %v2121_v18  ;;  %v2177_v33 = vadd.f32 %v2176_v30, %v1407_v5 }
 0x1fb   :  { %v2092_v47 = vpop.f32.mrf.mxu2 }
 0x1fc   :  { %v2093_v62 = vadd.f32 %v2092_v47, %v2079_v59 }
 0x1fd   :  { %v2188_v23 = vpop.f32.mrf.mxu1 }
 0x1fe   :  { %v2189_v34 = vadd.f32 %v2188_v23, %v2175_v31 }
 0x204   :  { %v2146_v61 = vpop.f32.mrf.mxu2 }
 0x205   :  { %v2147_v41 = vadd.f32 %v2146_v61, %v2133_v19  ;;  %v2190_v32 = vpop.f32.mrf.mxu1 }
 0x206   :  { %v2191_v37 = vadd.f32 %v2190_v32, %v2177_v33 }
 0x20c   :  { %v2148_v51 = vpop.f32.mrf.mxu2  ;;  %v2230_v53 = vpop.f32.mrf.mxu0 }
 0x20d   :  { %v2149_v46 = vadd.f32 %v2148_v51, %v2135_v20  ;;  %v2231_v59 = vadd.f32 %v2230_v53, %v1408_v56 }
 0x212   :  { %v2104_v52 = vpop.f32.mrf.mxu3 }
 0x213   :  { %v2105_v0 = vadd.f32 %v2104_v52, %v2091_v60 }
 0x214   :  { %v2202_v63 = vpop.f32.mrf.mxu2  ;;  %v2232_v57 = vpop.f32.mrf.mxu0 }
 0x215   :  { %v2277_v3 = vmax.f32 %v2105_v0, 0.0  ;;  %v2203_v38 = vadd.f32 %v2202_v63, %v2189_v34  ;;  %v2233_v61 = vadd.f32 %v2232_v57, %v1408_v56 }
 0x21a   :  { %v2106_v1 = vpop.f32.mrf.mxu3 }
 0x21b   :  { %v2107_v2 = vadd.f32 %v2106_v1, %v2093_v62 }
 0x21c   :  { %v2204_v36 = vpop.f32.mrf.mxu2 }
 0x21d   :  { %v2281_v4 = vmax.f32 %v2107_v2, 0.0  ;;  %v2205_v39 = vadd.f32 %v2204_v36, %v2191_v37  ;;  %v2244_v54 = vpop.f32.mrf.mxu1 }
 0x21e   :  { %v2245_v62 = vadd.f32 %v2244_v54, %v2231_v59 }
 0x21f   :  { %v2285_v12 = vpack.c.bf16 %v2281_v4, %v2277_v3 }
 0x221   :  { %2557 = vmatmul.bf16.vlgmr.msrb.gmra.mxu0 %v2285_v12 }
 0x222   :  { %v2160_v15 = vpop.f32.mrf.mxu3 }
 0x223   :  { %v2161_v22 = vadd.f32 %v2160_v15, %v2147_v41 }
 0x225   :  { %v2278_v26 = vmax.f32 %v2161_v22, 0.0  ;;  %v2246_v60 = vpop.f32.mrf.mxu1 }
 0x226   :  { %v2247_v49 = vadd.f32 %v2246_v60, %v2233_v61 }
 0x22a   :  { %v2162_v24 = vpop.f32.mrf.mxu3 }
 0x22b   :  { %v2163_v25 = vadd.f32 %v2162_v24, %v2149_v46 }
 0x22d   :  { %v2282_v27 = vmax.f32 %v2163_v25, 0.0 }
 0x22f   :  { %v2286_v29 = vpack.c.bf16 %v2282_v27, %v2278_v26 }
 0x231   :  { %2571 = vmatmul.bf16.vlgmr.msrb.gmra.mxu1 %v2286_v29 }
 0x232   :  { %v2216_v11 = vpop.f32.mrf.mxu3 }
 0x233   :  { %v2217_v42 = vadd.f32 %v2216_v11, %v2203_v38 }
 0x234   :  { %v2258_v55 = vpop.f32.mrf.mxu2 }
 0x235   :  { %v2279_v48 = vmax.f32 %v2217_v42, 0.0  ;;  %v2259_v1 = vadd.f32 %v2258_v55, %v2245_v62 }
 0x23a   :  { %v2218_v44 = vpop.f32.mrf.mxu3 }
 0x23b   :  { %v2219_v47 = vadd.f32 %v2218_v44, %v2205_v39 }
 0x23c   :  { %v2260_v0 = vpop.f32.mrf.mxu2 }
 0x23d   :  { %v2283_v50 = vmax.f32 %v2219_v47, 0.0  ;;  %v2261_v2 = vadd.f32 %v2260_v0, %v2247_v49 }
 0x23f   :  { %v2287_v52 = vpack.c.bf16 %v2283_v50, %v2279_v48 }
 0x241   :  { %2585 = vmatmul.bf16.vlgmr.msrb.gmra.mxu2 %v2287_v52 }
 0x252   :  { %v2272_v58 = vpop.f32.mrf.mxu3 }
 0x253   :  { %v2273_v3 = vadd.f32 %v2272_v58, %v2259_v1 }
 0x255   :  { %v2280_v7 = vmax.f32 %v2273_v3, 0.0 }
 0x25a   :  { %v2274_v4 = vpop.f32.mrf.mxu3 }
 0x25b   :  { %v2275_v6 = vadd.f32 %v2274_v4, %v2261_v2 }
 0x25d   :  { %v2284_v8 = vmax.f32 %v2275_v6, 0.0 }
 0x25f   :  { %v2288_v10 = vpack.c.bf16 %v2284_v8, %v2280_v7 }
 0x261   :  { %2599 = vmatmul.bf16.vlgmr.msrb.gmra.mxu3 %v2288_v10 }
 0x29e   :  { %v2558_v12 = vpop.f32.mrf.mxu0 }
 0x29f   :  { %v2559_v51 = vadd.f32 %v4112_v40, %v2558_v12 }
 0x2a6   :  { %v2560_v17 = vpop.f32.mrf.mxu0 }
 0x2a7   :  { %v2561_v41 = vadd.f32 %v4112_v40, %v2560_v17 }
 0x2ae   :  { %v2572_v13 = vpop.f32.mrf.mxu1 }
 0x2af   :  { %v2573_v15 = vadd.f32 %v2572_v13, %v2559_v51 }
 0x2b6   :  { %v2574_v20 = vpop.f32.mrf.mxu1 }
 0x2b7   :  { %v2575_v45 = vadd.f32 %v2574_v20, %v2561_v41 }
 0x2c4   :  { %v2586_v14 = vpop.f32.mrf.mxu2 }
 0x2c5   :  { %v2587_v16 = vadd.f32 %v2586_v14, %v2573_v15 }
 0x2cc   :  { %v2588_v21 = vpop.f32.mrf.mxu2 }
 0x2cd   :  { %v2589_v46 = vadd.f32 %v2588_v21, %v2575_v45 }
 0x2e4   :  { %v2600_v18 = vpop.f32.mrf.mxu3 }
 0x2e5   :  { %v2601_v19 = vadd.f32 %v2600_v18, %v2587_v16 }
 0x2e7   :  { %2605 = vst [vmem:[#allocation14] sm:$0xff] %v2601_v19 }
 0x2ec   :  { %v2602_v22 = vpop.f32.mrf.mxu3 }
 0x2ed   :  { %v2603_v23 = vadd.f32 %v2602_v22, %v2589_v46 }
 0x2ef   :  { %2606 = vst [vmem:[#allocation14 + $0x8] sm:$0xff] %v2603_v23 }
 0x2f0   :  { %2619 = dma.vmem_to_hbm [thread:$0]  %s2612_s1, 256, %s2614_s26, [#allocation4], %s4327_s8, %s4327_s8, %s4328_s27  }
 0x2f1   :  { %4313 = dma.done.wait [#allocation4], 256  }
 0x2f2   :  { %4314 = vsyncadd [#allocation4], 4294967040 }
 0x2f3   :  { %2624 = vsyncpa [#allocation3], 1 }
 0x2f4   :  { %2625 = vsyncpa [#allocation6], 1 }
 0x2f5   :  { %2626 = vsyncpa [#allocation9], 1 }
 0x2f6   :  { %2627 = vsyncpa [#allocation12], 1 }
 0x2f7   :  { %2628 = vsyncpa [#allocation4], 1 }

</bundles_post_ra>
